<compile_context>
chip_gen: v7x
topology: tpu7x:2x2x1
jax: 0.10.0
libtpu: 0.0.40
codegen_flags: <defaults>
</compile_context>

<pallas_src>
import functools

import jax
import jax.numpy as jnp
from jax.experimental import pallas as pl
from jax.experimental.pallas import tpu as pltpu


# ----------------------------- kernel ---------------------------------------


def _layernorm(x, gamma, beta, true_dim, eps=1e-5):
    """LayerNorm over the last axis using `true_dim` as the denominator.

    Padded lanes of x are exactly zero, so sums over the padded width equal
    sums over the true width; gamma/beta are zero in the padded lanes, which
    keeps padded lanes zero after normalization.  Matches PyTorch's biased
    variance + eps-inside-sqrt convention.
    """
    inv_n = 1.0 / true_dim
    s = jnp.sum(x, axis=-1, keepdims=True)
    ss = jnp.sum(x * x, axis=-1, keepdims=True)
    mean = s * inv_n
    var = ss * inv_n - mean * mean
    return (x - mean) * jax.lax.rsqrt(var + eps) * gamma + beta


def encoder_kernel(
    x_ref,
    wqkv_ref, bqkv_ref,
    wo_ref, bo_ref,
    w1_ref, b1_ref,
    w2_ref, b2_ref,
    g1_ref, be1_ref,
    g2_ref, be2_ref,
    o_ref,
    *,
    batch, seq, num_heads, head_dim, chunk_rows,
):
    E = num_heads * head_dim          # true embed dim
    Ep = o_ref.shape[-1]              # lane-padded embed dim (multiple of 128)
    Mb = batch * seq                  # rows in this batch block
    layer = pl.program_id(1)

    # Layer 0 of each batch block: seed the resident activation.  The output
    # block's index_map is constant along the layer axis, so it stays in VMEM
    # across all layers of this batch block and acts as the layer-to-layer
    # carry (written back to HBM only when the batch block changes / at end).
    @pl.when(layer == 0)
    def _():
        o_ref[...] = x_ref[...]

    x = o_ref[...]                    # (Mb, Ep) f32; padded lanes are zero
    xb = x.astype(jnp.bfloat16)

    # --- fused QKV projection: one (Mb, Ep) @ (Ep, 3Ep) MXU push ---
    qkv = jnp.dot(xb, wqkv_ref[...], preferred_element_type=jnp.float32)
    qkv = qkv + bqkv_ref[...]         # (Mb, 3Ep) f32
    scale = 1.0 / (head_dim ** 0.5)
    q = (qkv[:, :Ep] * scale).reshape(batch, seq, Ep).astype(jnp.bfloat16)
    k = qkv[:, Ep:2 * Ep].reshape(batch, seq, Ep).astype(jnp.bfloat16)
    v = qkv[:, 2 * Ep:].reshape(batch, seq, Ep).astype(jnp.bfloat16)

    # --- attention: per-head scores/softmax/context (batched over the batch
    # block via 3-D einsums), head contexts concatenated along lanes, then a
    # single (Mb, Ep) @ (Ep, Ep) output projection (no per-head K=head_dim
    # projection matmuls, no per-head f32 (M,E) accumulation adds).
    # TODO(synk): repack QKV head-major / pad head_dim to a lane tile so the
    # per-head slices are tile-aligned views instead of sub-lane shuffles.
    # TODO(synk): for long sequences, tile the KV axis (flash-style online
    # softmax) instead of materializing full (S, S) scores per head.
    ctx_pieces = []
    for h in range(num_heads):
        lo = h * head_dim
        qh = q[:, :, lo:lo + head_dim]            # (bb, S, hd)
        kh = k[:, :, lo:lo + head_dim]
        vh = v[:, :, lo:lo + head_dim]
        s = jnp.einsum("bqd,bkd->bqk", qh, kh,
                       preferred_element_type=jnp.float32)   # (bb, S, S)
        s = s - jnp.max(s, axis=-1, keepdims=True)
        p = jnp.exp(s)
        p = p * pl.reciprocal(jnp.sum(p, axis=-1, keepdims=True), approx=True)
        ctx_pieces.append(
            jnp.einsum("bqk,bkd->bqd", p.astype(jnp.bfloat16), vh,
                       preferred_element_type=jnp.float32))  # (bb, S, hd)
    if Ep > E:
        ctx_pieces.append(jnp.zeros((batch, seq, Ep - E), jnp.float32))
    ctx = jnp.concatenate(ctx_pieces, axis=-1).reshape(Mb, Ep)

    attn_out = jnp.dot(ctx.astype(jnp.bfloat16), wo_ref[...],
                       preferred_element_type=jnp.float32) + bo_ref[...]

    # residual + layernorm 1 (dropout p=0.0 -> identity)
    x1 = _layernorm(x + attn_out, g1_ref[...], be1_ref[...], true_dim=E)

    # Stage x1 in the resident output block; the FFN is row-wise independent,
    # so each chunk below reads its own rows of x1 and overwrites them with
    # the final x2 — this bounds the (rows, Fp) f32 intermediate.
    o_ref[...] = x1

    def ffn_chunk(start, rows):
        x1_c = o_ref[pl.ds(start, rows), :]                   # (rows, Ep)
        h1 = jnp.dot(x1_c.astype(jnp.bfloat16), w1_ref[...],
                     preferred_element_type=jnp.float32) + b1_ref[...]
        # LeakyReLU(negative_slope=-0.01), exactly as in the PyTorch module
        h1 = jnp.where(h1 >= 0, h1, -0.01 * h1)
        ffn = jnp.dot(h1.astype(jnp.bfloat16), w2_ref[...],
                      preferred_element_type=jnp.float32) + b2_ref[...]
        x2 = _layernorm(x1_c + ffn, g2_ref[...], be2_ref[...], true_dim=E)
        o_ref[pl.ds(start, rows), :] = x2.astype(o_ref.dtype)

    n_chunks = Mb // chunk_rows
    if n_chunks <= 1:
        ffn_chunk(0, Mb)
    else:
        def body(i, carry):
            ffn_chunk(pl.multiple_of(i * chunk_rows, chunk_rows), chunk_rows)
            return carry
        jax.lax.fori_loop(0, n_chunks, body, 0)


# ----------------------------- wrapper ---------------------------------------


def _round_up(x, m):
    return (x + m - 1) // m * m


def _pad2(a, rows, cols):
    return jnp.pad(a, ((0, rows - a.shape[0]), (0, cols - a.shape[1])))


def pack_params(layer_params):
    """Stack per-layer params along a leading L axis, fuse QKV, zero-pad E/F
    to lane multiples (128), and cast matmul weights to bf16."""
    E = layer_params[0]["wq"].shape[0]
    F = layer_params[0]["w1"].shape[1]
    Ep, Fp = _round_up(E, 128), _round_up(F, 128)
    bf16 = jnp.bfloat16

    wqkv = jnp.stack([jnp.concatenate([_pad2(p["wq"], Ep, Ep),
                                       _pad2(p["wk"], Ep, Ep),
                                       _pad2(p["wv"], Ep, Ep)], axis=1)
                      for p in layer_params]).astype(bf16)          # (L, Ep, 3Ep)
    bqkv = jnp.stack([jnp.concatenate([_pad2(p["bq"], 1, Ep),
                                       _pad2(p["bk"], 1, Ep),
                                       _pad2(p["bv"], 1, Ep)], axis=1)
                      for p in layer_params])                       # (L, 1, 3Ep)
    wo = jnp.stack([_pad2(p["wo"], Ep, Ep) for p in layer_params]).astype(bf16)
    bo = jnp.stack([_pad2(p["bo"], 1, Ep) for p in layer_params])
    w1 = jnp.stack([_pad2(p["w1"], Ep, Fp) for p in layer_params]).astype(bf16)
    b1 = jnp.stack([_pad2(p["b1"], 1, Fp) for p in layer_params])
    w2 = jnp.stack([_pad2(p["w2"], Fp, Ep) for p in layer_params]).astype(bf16)
    b2 = jnp.stack([_pad2(p["b2"], 1, Ep) for p in layer_params])
    # gamma/beta padded with ZEROS so padded lanes stay zero after LayerNorm
    g1 = jnp.stack([_pad2(p["g1"], 1, Ep) for p in layer_params])
    be1 = jnp.stack([_pad2(p["be1"], 1, Ep) for p in layer_params])
    g2 = jnp.stack([_pad2(p["g2"], 1, Ep) for p in layer_params])
    be2 = jnp.stack([_pad2(p["be2"], 1, Ep) for p in layer_params])
    return [wqkv, bqkv, wo, bo, w1, b1, w2, b2, g1, be1, g2, be2], Ep, Fp


def _vmem_limit_bytes():
    """Generation-aware scoped VMEM limit (leave headroom for weight DMA)."""
    default = 48 * 1024 * 1024
    try:
        info = pltpu.get_tpu_info()
        cap = getattr(info, "vmem_capacity_bytes", None)
        if not cap:
            return default
        return max(16 * 1024 * 1024, min(int(cap) * 3 // 4, 100 * 1024 * 1024))
    except Exception:
        return default


def _pick_batch_block(B, S):
    for bb in range(1, B + 1):
        if B % bb == 0 and bb * S >= 128:
            return bb
    return B


def _pick_chunk_rows(m):
    for c in (512, 256, 128, 64, 32, 16, 8):
        if c <= m and m % c == 0:
            return c
    return m


def transformer_encoder(x, layer_params, num_heads, batch_block=None,
                        ffn_chunk_rows=None):
    """x: (B, S, E) float32.  All layers run in a single pallas_call."""
    B, S, E = x.shape
    L = len(layer_params)
    head_dim = E // num_heads
    M = B * S

    weights, Ep, Fp = pack_params(layer_params)

    # batch-block size (rows per grid step = bb * S)
    bb = batch_block if batch_block is not None else _pick_batch_block(B, S)
    if B % bb != 0:
        bb = B
    if bb != B and (bb * S) % 8 != 0:   # keep the block sublane-aligned
        bb = B
    Mb = bb * S

    chunk = ffn_chunk_rows if ffn_chunk_rows is not None else _pick_chunk_rows(Mb)
    if Mb % chunk != 0 or (chunk % 8 != 0 and chunk != Mb):
        chunk = Mb

    x2d = x.reshape(M, E)
    if Ep > E:
        x2d = jnp.pad(x2d, ((0, 0), (0, Ep - E)))

    def weight_spec(arr):
        nd = arr.ndim
        # one layer's slice per grid step; the leading L axis is squeezed away
        return pl.BlockSpec((None,) + arr.shape[1:],
                            lambda b, l: (l,) + (0,) * (nd - 1))

    kernel = functools.partial(
        encoder_kernel, batch=bb, seq=S, num_heads=num_heads,
        head_dim=head_dim, chunk_rows=chunk)

    # TODO(synk): the x input is only read at layer==0 of each batch block; a
    # single-buffered BlockSpec (pipeline_mode) would free its double buffer.
    out2d = pl.pallas_call(
        kernel,
        out_shape=jax.ShapeDtypeStruct((M, Ep), jnp.float32),
        grid_spec=pltpu.PrefetchScalarGridSpec(
            num_scalar_prefetch=0,
            grid=(B // bb, L),
            in_specs=[pl.BlockSpec((Mb, Ep), lambda b, l: (b, 0))]
            + [weight_spec(w) for w in weights],
            out_specs=pl.BlockSpec((Mb, Ep), lambda b, l: (b, 0)),
        ),
        compiler_params=pltpu.CompilerParams(
            # batch blocks are independent (parallel); layers are sequential
            # (the activation is carried in the resident output block).
            dimension_semantics=("parallel", "arbitrary"),
            vmem_limit_bytes=_vmem_limit_bytes(),
        ),
    )(x2d, *weights)
    return out2d[:, :E].reshape(B, S, E)


# ----------------------- parameter initialization ----------------------------


def init_layer_params(key, embed_dim, ff_dim):
    ks = jax.random.split(key, 16)
    n = lambda k, shape, s=0.05: (s * jax.random.normal(k, shape)).astype(jnp.float32)
    return {
        # weights stored IN -> OUT (transposed w.r.t. torch.nn.Linear)
        "wq": n(ks[0], (embed_dim, embed_dim)),
        "bq": n(ks[1], (1, embed_dim)),
        "wk": n(ks[2], (embed_dim, embed_dim)),
        "bk": n(ks[3], (1, embed_dim)),
        "wv": n(ks[4], (embed_dim, embed_dim)),
        "bv": n(ks[5], (1, embed_dim)),
        "wo": n(ks[6], (embed_dim, embed_dim)),
        "bo": n(ks[7], (1, embed_dim)),
        "w1": n(ks[8], (embed_dim, ff_dim)),
        "b1": n(ks[9], (1, ff_dim)),
        "w2": n(ks[10], (ff_dim, embed_dim)),
        "b2": n(ks[11], (1, embed_dim)),
        "g1": (1.0 + n(ks[12], (1, embed_dim), 0.01)),
        "be1": n(ks[13], (1, embed_dim), 0.01),
        "g2": (1.0 + n(ks[14], (1, embed_dim), 0.01)),
        "be2": n(ks[15], (1, embed_dim), 0.01),
    }


# ----------------------------- pure-JAX reference -----------------------------


def _ref_layernorm(x, g, b, eps=1e-5):
    m = jnp.mean(x, axis=-1, keepdims=True)
    v = jnp.mean((x - m) ** 2, axis=-1, keepdims=True)
    return (x - m) / jnp.sqrt(v + eps) * g + b


def ref_block(x, p, num_heads):
    B, S, E = x.shape
    hd = E // num_heads
    q = x @ p["wq"] + p["bq"][0]
    k = x @ p["wk"] + p["bk"][0]
    v = x @ p["wv"] + p["bv"][0]
    q = q.reshape(B, S, num_heads, hd).transpose(0, 2, 1, 3)
    k = k.reshape(B, S, num_heads, hd).transpose(0, 2, 1, 3)
    v = v.reshape(B, S, num_heads, hd).transpose(0, 2, 1, 3)
    scores = jnp.einsum("bhqd,bhkd->bhqk", q, k) / (hd ** 0.5)
    attn = jax.nn.softmax(scores, axis=-1)
    out = jnp.einsum("bhqk,bhkd->bhqd", attn, v)
    out = out.transpose(0, 2, 1, 3).reshape(B, S, E)
    attn_out = out @ p["wo"] + p["bo"][0]
    x1 = _ref_layernorm(x + attn_out, p["g1"][0], p["be1"][0])
    h = x1 @ p["w1"] + p["b1"][0]
    h = jnp.where(h >= 0, h, -0.01 * h)
    ffn = h @ p["w2"] + p["b2"][0]
    return _ref_layernorm(x1 + ffn, p["g2"][0], p["be2"][0])


def ref_encoder(x, layer_params, num_heads):
    for p in layer_params:
        x = ref_block(x, p, num_heads)
    return x


# --------------------------------- main ---------------------------------------


if __name__ == "__main__":
    embed_dim = 32
    ff_dim = 64
    num_heads = 4
    num_layers = 2
    B, S = 2, 8

    root = jax.random.PRNGKey(0)
    kx, *layer_keys = jax.random.split(root, 1 + num_layers)
    x = jax.random.normal(kx, (B, S, embed_dim), dtype=jnp.float32)
    layer_params = [init_layer_params(k, embed_dim, ff_dim) for k in layer_keys]

    expected = ref_encoder(x, layer_params, num_layers and num_heads)

    # batch-parallel grid (grid=(2, L)): exercises the carry reset across
    # batch blocks and the megacore-friendly partitioning.
    out = transformer_encoder(x, layer_params, num_heads, batch_block=1)
    out = jax.block_until_ready(out)
    assert out.shape == (B, S, embed_dim)
    assert jnp.allclose(out, expected, rtol=2e-2, atol=2e-2), \
        "mismatch vs reference (batch_block=1)"

    # single batch block + forced FFN row chunking: exercises the fori_loop
    # chunked-FFN path.
    out2 = transformer_encoder(x, layer_params, num_heads,
                               batch_block=2, ffn_chunk_rows=8)
    out2 = jax.block_until_ready(out2)
    assert jnp.allclose(out2, expected, rtol=2e-2, atol=2e-2), \
        "mismatch vs reference (batch_block=2, chunked FFN)"

    print("KERNEL_OK")
</pallas_src>

<mosaic_0001>
module attributes {stable_mosaic.version = 11 : i64} {
  func.func @encoder_kernel(%arg0: i32, %arg1: i32, %arg2: memref<8x128xf32, #tpu.memory_space<vmem>>, %arg3: memref<1x128x384xbf16, #tpu.memory_space<vmem>>, %arg4: memref<1x1x384xf32, #tpu.memory_space<vmem>>, %arg5: memref<1x128x128xbf16, #tpu.memory_space<vmem>>, %arg6: memref<1x1x128xf32, #tpu.memory_space<vmem>>, %arg7: memref<1x128x128xbf16, #tpu.memory_space<vmem>>, %arg8: memref<1x1x128xf32, #tpu.memory_space<vmem>>, %arg9: memref<1x128x128xbf16, #tpu.memory_space<vmem>>, %arg10: memref<1x1x128xf32, #tpu.memory_space<vmem>>, %arg11: memref<1x1x128xf32, #tpu.memory_space<vmem>>, %arg12: memref<1x1x128xf32, #tpu.memory_space<vmem>>, %arg13: memref<1x1x128xf32, #tpu.memory_space<vmem>>, %arg14: memref<1x1x128xf32, #tpu.memory_space<vmem>>, %arg15: memref<8x128xf32, #tpu.memory_space<vmem>>) attributes {dimension_semantics = [#tpu.dimension_semantics<parallel>, #tpu.dimension_semantics<arbitrary>], iteration_bounds = array<i64: 2, 2>, scalar_prefetch = 0 : i64, scratch_operands = 0 : i64, tpu.core_type = #tpu.core_type<tc>, window_params = [{transform_indices = @transform_0, window_bounds = array<i64: 8, 128>}, {transform_indices = @transform_1, window_bounds = array<i64: 1, 128, 384>}, {transform_indices = @transform_2, window_bounds = array<i64: 1, 1, 384>}, {transform_indices = @transform_3, window_bounds = array<i64: 1, 128, 128>}, {transform_indices = @transform_4, window_bounds = array<i64: 1, 1, 128>}, {transform_indices = @transform_5, window_bounds = array<i64: 1, 128, 128>}, {transform_indices = @transform_6, window_bounds = array<i64: 1, 1, 128>}, {transform_indices = @transform_7, window_bounds = array<i64: 1, 128, 128>}, {transform_indices = @transform_8, window_bounds = array<i64: 1, 1, 128>}, {transform_indices = @transform_9, window_bounds = array<i64: 1, 1, 128>}, {transform_indices = @transform_10, window_bounds = array<i64: 1, 1, 128>}, {transform_indices = @transform_11, window_bounds = array<i64: 1, 1, 128>}, {transform_indices = @transform_12, window_bounds = array<i64: 1, 1, 128>}, {transform_indices = @transform_13, window_bounds = array<i64: 8, 128>}]} {
    %c0_i32 = arith.constant 0 : i32
    %0 = arith.cmpi eq, %arg1, %c0_i32 : i32
    %1 = arith.extui %0 : i1 to i32
    %c0_i32_0 = arith.constant 0 : i32
    %2 = arith.cmpi ne, %1, %c0_i32_0 : i32
    scf.if %2 {
      %c0_77 = arith.constant 0 : index
      %c0_78 = arith.constant 0 : index
      %176 = vector.load %arg2[%c0_77, %c0_78] : memref<8x128xf32, #tpu.memory_space<vmem>>, vector<8x128xf32>
      %c0_79 = arith.constant 0 : index
      %c0_80 = arith.constant 0 : index
      %177 = vector.load %arg15[%c0_79, %c0_80] : memref<8x128xf32, #tpu.memory_space<vmem>>, vector<8x128xf32>
      tpu.vector_store %arg15[%c0_79, %c0_80], %176 {strides = array<i32>} : memref<8x128xf32, #tpu.memory_space<vmem>>, vector<8x128xf32>,
    } else {
    }
    %c0 = arith.constant 0 : index
    %c0_1 = arith.constant 0 : index
    %3 = vector.load %arg15[%c0, %c0_1] : memref<8x128xf32, #tpu.memory_space<vmem>>, vector<8x128xf32>
    %4 = arith.truncf %3 : vector<8x128xf32> to vector<8x128xbf16>
    %c0_2 = arith.constant 0 : index
    %c0_3 = arith.constant 0 : index
    %c0_4 = arith.constant 0 : index
    %5 = vector.load %arg3[%c0_2, %c0_3, %c0_4] : memref<1x128x384xbf16, #tpu.memory_space<vmem>>, vector<1x128x384xbf16>
    %6 = vector.shape_cast %5 : vector<1x128x384xbf16> to vector<128x384xbf16>
    %cst = arith.constant dense<0.000000e+00> : vector<8x384xf32>
    %7 = tpu.matmul %4, %6, %cst {dimension_numbers = #tpu.dot_dimension_numbers<[1], [0], [0], [1], [0, 0, 1, 1], [], []>} : vector<8x128xbf16>, vector<128x384xbf16>, vector<8x384xf32> -> vector<8x384xf32>
    %c0_5 = arith.constant 0 : index
    %c0_6 = arith.constant 0 : index
    %c0_7 = arith.constant 0 : index
    %8 = vector.load %arg4[%c0_5, %c0_6, %c0_7] : memref<1x1x384xf32, #tpu.memory_space<vmem>>, vector<1x1x384xf32>
    %9 = vector.shape_cast %8 : vector<1x1x384xf32> to vector<1x384xf32>
    %10 = vector.broadcast %9 : vector<1x384xf32> to vector<8x384xf32>
    %11 = arith.addf %7, %10 : vector<8x384xf32>
    %12 = vector.extract_strided_slice %11 {offsets = [0, 0], sizes = [8, 128], strides = [1, 1]} : vector<8x384xf32> to vector<8x128xf32>
    %cst_8 = arith.constant 0.353553385 : f32
    %13 = vector.broadcast %cst_8 : f32 to vector<8x128xf32>
    %14 = arith.mulf %12, %13 : vector<8x128xf32>
    %15 = vector.shape_cast %14 : vector<8x128xf32> to vector<1x8x128xf32>
    %16 = arith.truncf %15 : vector<1x8x128xf32> to vector<1x8x128xbf16>
    %17 = vector.extract_strided_slice %11 {offsets = [0, 128], sizes = [8, 128], strides = [1, 1]} : vector<8x384xf32> to vector<8x128xf32>
    %18 = vector.shape_cast %17 : vector<8x128xf32> to vector<1x8x128xf32>
    %19 = arith.truncf %18 : vector<1x8x128xf32> to vector<1x8x128xbf16>
    %20 = vector.extract_strided_slice %11 {offsets = [0, 256], sizes = [8, 128], strides = [1, 1]} : vector<8x384xf32> to vector<8x128xf32>
    %21 = vector.shape_cast %20 : vector<8x128xf32> to vector<1x8x128xf32>
    %22 = arith.truncf %21 : vector<1x8x128xf32> to vector<1x8x128xbf16>
    %23 = vector.extract_strided_slice %16 {offsets = [0, 0, 0], sizes = [1, 8, 8], strides = [1, 1, 1]} : vector<1x8x128xbf16> to vector<1x8x8xbf16>
    %24 = vector.extract_strided_slice %19 {offsets = [0, 0, 0], sizes = [1, 8, 8], strides = [1, 1, 1]} : vector<1x8x128xbf16> to vector<1x8x8xbf16>
    %25 = vector.extract_strided_slice %22 {offsets = [0, 0, 0], sizes = [1, 8, 8], strides = [1, 1, 1]} : vector<1x8x128xbf16> to vector<1x8x8xbf16>
    "tpu.trace_start"() <{level = 10 : i32, message = "bqd,bkd->bqk"}> : () -> ()
    %cst_9 = arith.constant dense<0.000000e+00> : vector<1x8x8xf32>
    %26 = tpu.matmul %23, %24, %cst_9 {dimension_numbers = #tpu.dot_dimension_numbers<[2], [2], [1], [1], [0, 0, 0, 1, 1, 1], [0], [0]>} : vector<1x8x8xbf16>, vector<1x8x8xbf16>, vector<1x8x8xf32> -> vector<1x8x8xf32>
    "tpu.trace_stop"() : () -> ()
    %cst_10 = arith.constant dense<0xFF800000> : vector<1x8xf32>
    %27 = vector.multi_reduction <maximumf>, %26, %cst_10 [2] : vector<1x8x8xf32> to vector<1x8xf32>
    %28 = vector.shape_cast %27 : vector<1x8xf32> to vector<1x8x1xf32>
    %29 = vector.broadcast %28 : vector<1x8x1xf32> to vector<1x8x8xf32>
    %30 = arith.subf %26, %29 : vector<1x8x8xf32>
    %31 = math.exp %30 : vector<1x8x8xf32>
    %cst_11 = arith.constant dense<0.000000e+00> : vector<1x8xf32>
    %32 = vector.multi_reduction <add>, %31, %cst_11 [2] : vector<1x8x8xf32> to vector<1x8xf32>
    %33 = vector.shape_cast %32 : vector<1x8xf32> to vector<1x8x1xf32>
    %34 = tpu.reciprocal %33 {approx = true} : vector<1x8x1xf32> -> vector<1x8x1xf32>
    %35 = vector.broadcast %34 : vector<1x8x1xf32> to vector<1x8x8xf32>
    %36 = arith.mulf %31, %35 : vector<1x8x8xf32>
    %37 = arith.truncf %36 : vector<1x8x8xf32> to vector<1x8x8xbf16>
    "tpu.trace_start"() <{level = 10 : i32, message = "bqk,bkd->bqd"}> : () -> ()
    %cst_12 = arith.constant dense<0.000000e+00> : vector<1x8x8xf32>
    %38 = tpu.matmul %37, %25, %cst_12 {dimension_numbers = #tpu.dot_dimension_numbers<[2], [1], [1], [2], [0, 0, 0, 1, 1, 2], [0], [0]>} : vector<1x8x8xbf16>, vector<1x8x8xbf16>, vector<1x8x8xf32> -> vector<1x8x8xf32>
    "tpu.trace_stop"() : () -> ()
    %39 = vector.extract_strided_slice %16 {offsets = [0, 0, 8], sizes = [1, 8, 8], strides = [1, 1, 1]} : vector<1x8x128xbf16> to vector<1x8x8xbf16>
    %40 = vector.extract_strided_slice %19 {offsets = [0, 0, 8], sizes = [1, 8, 8], strides = [1, 1, 1]} : vector<1x8x128xbf16> to vector<1x8x8xbf16>
    %41 = vector.extract_strided_slice %22 {offsets = [0, 0, 8], sizes = [1, 8, 8], strides = [1, 1, 1]} : vector<1x8x128xbf16> to vector<1x8x8xbf16>
    "tpu.trace_start"() <{level = 10 : i32, message = "bqd,bkd->bqk"}> : () -> ()
    %cst_13 = arith.constant dense<0.000000e+00> : vector<1x8x8xf32>
    %42 = tpu.matmul %39, %40, %cst_13 {dimension_numbers = #tpu.dot_dimension_numbers<[2], [2], [1], [1], [0, 0, 0, 1, 1, 1], [0], [0]>} : vector<1x8x8xbf16>, vector<1x8x8xbf16>, vector<1x8x8xf32> -> vector<1x8x8xf32>
    "tpu.trace_stop"() : () -> ()
    %cst_14 = arith.constant dense<0xFF800000> : vector<1x8xf32>
    %43 = vector.multi_reduction <maximumf>, %42, %cst_14 [2] : vector<1x8x8xf32> to vector<1x8xf32>
    %44 = vector.shape_cast %43 : vector<1x8xf32> to vector<1x8x1xf32>
    %45 = vector.broadcast %44 : vector<1x8x1xf32> to vector<1x8x8xf32>
    %46 = arith.subf %42, %45 : vector<1x8x8xf32>
    %47 = math.exp %46 : vector<1x8x8xf32>
    %cst_15 = arith.constant dense<0.000000e+00> : vector<1x8xf32>
    %48 = vector.multi_reduction <add>, %47, %cst_15 [2] : vector<1x8x8xf32> to vector<1x8xf32>
    %49 = vector.shape_cast %48 : vector<1x8xf32> to vector<1x8x1xf32>
    %50 = tpu.reciprocal %49 {approx = true} : vector<1x8x1xf32> -> vector<1x8x1xf32>
    %51 = vector.broadcast %50 : vector<1x8x1xf32> to vector<1x8x8xf32>
    %52 = arith.mulf %47, %51 : vector<1x8x8xf32>
    %53 = arith.truncf %52 : vector<1x8x8xf32> to vector<1x8x8xbf16>
    "tpu.trace_start"() <{level = 10 : i32, message = "bqk,bkd->bqd"}> : () -> ()
    %cst_16 = arith.constant dense<0.000000e+00> : vector<1x8x8xf32>
    %54 = tpu.matmul %53, %41, %cst_16 {dimension_numbers = #tpu.dot_dimension_numbers<[2], [1], [1], [2], [0, 0, 0, 1, 1, 2], [0], [0]>} : vector<1x8x8xbf16>, vector<1x8x8xbf16>, vector<1x8x8xf32> -> vector<1x8x8xf32>
    "tpu.trace_stop"() : () -> ()
    %55 = vector.extract_strided_slice %16 {offsets = [0, 0, 16], sizes = [1, 8, 8], strides = [1, 1, 1]} : vector<1x8x128xbf16> to vector<1x8x8xbf16>
    %56 = vector.extract_strided_slice %19 {offsets = [0, 0, 16], sizes = [1, 8, 8], strides = [1, 1, 1]} : vector<1x8x128xbf16> to vector<1x8x8xbf16>
    %57 = vector.extract_strided_slice %22 {offsets = [0, 0, 16], sizes = [1, 8, 8], strides = [1, 1, 1]} : vector<1x8x128xbf16> to vector<1x8x8xbf16>
    "tpu.trace_start"() <{level = 10 : i32, message = "bqd,bkd->bqk"}> : () -> ()
    %cst_17 = arith.constant dense<0.000000e+00> : vector<1x8x8xf32>
    %58 = tpu.matmul %55, %56, %cst_17 {dimension_numbers = #tpu.dot_dimension_numbers<[2], [2], [1], [1], [0, 0, 0, 1, 1, 1], [0], [0]>} : vector<1x8x8xbf16>, vector<1x8x8xbf16>, vector<1x8x8xf32> -> vector<1x8x8xf32>
    "tpu.trace_stop"() : () -> ()
    %cst_18 = arith.constant dense<0xFF800000> : vector<1x8xf32>
    %59 = vector.multi_reduction <maximumf>, %58, %cst_18 [2] : vector<1x8x8xf32> to vector<1x8xf32>
    %60 = vector.shape_cast %59 : vector<1x8xf32> to vector<1x8x1xf32>
    %61 = vector.broadcast %60 : vector<1x8x1xf32> to vector<1x8x8xf32>
    %62 = arith.subf %58, %61 : vector<1x8x8xf32>
    %63 = math.exp %62 : vector<1x8x8xf32>
    %cst_19 = arith.constant dense<0.000000e+00> : vector<1x8xf32>
    %64 = vector.multi_reduction <add>, %63, %cst_19 [2] : vector<1x8x8xf32> to vector<1x8xf32>
    %65 = vector.shape_cast %64 : vector<1x8xf32> to vector<1x8x1xf32>
    %66 = tpu.reciprocal %65 {approx = true} : vector<1x8x1xf32> -> vector<1x8x1xf32>
    %67 = vector.broadcast %66 : vector<1x8x1xf32> to vector<1x8x8xf32>
    %68 = arith.mulf %63, %67 : vector<1x8x8xf32>
    %69 = arith.truncf %68 : vector<1x8x8xf32> to vector<1x8x8xbf16>
    "tpu.trace_start"() <{level = 10 : i32, message = "bqk,bkd->bqd"}> : () -> ()
    %cst_20 = arith.constant dense<0.000000e+00> : vector<1x8x8xf32>
    %70 = tpu.matmul %69, %57, %cst_20 {dimension_numbers = #tpu.dot_dimension_numbers<[2], [1], [1], [2], [0, 0, 0, 1, 1, 2], [0], [0]>} : vector<1x8x8xbf16>, vector<1x8x8xbf16>, vector<1x8x8xf32> -> vector<1x8x8xf32>
    "tpu.trace_stop"() : () -> ()
    %71 = vector.extract_strided_slice %16 {offsets = [0, 0, 24], sizes = [1, 8, 8], strides = [1, 1, 1]} : vector<1x8x128xbf16> to vector<1x8x8xbf16>
    %72 = vector.extract_strided_slice %19 {offsets = [0, 0, 24], sizes = [1, 8, 8], strides = [1, 1, 1]} : vector<1x8x128xbf16> to vector<1x8x8xbf16>
    %73 = vector.extract_strided_slice %22 {offsets = [0, 0, 24], sizes = [1, 8, 8], strides = [1, 1, 1]} : vector<1x8x128xbf16> to vector<1x8x8xbf16>
    "tpu.trace_start"() <{level = 10 : i32, message = "bqd,bkd->bqk"}> : () -> ()
    %cst_21 = arith.constant dense<0.000000e+00> : vector<1x8x8xf32>
    %74 = tpu.matmul %71, %72, %cst_21 {dimension_numbers = #tpu.dot_dimension_numbers<[2], [2], [1], [1], [0, 0, 0, 1, 1, 1], [0], [0]>} : vector<1x8x8xbf16>, vector<1x8x8xbf16>, vector<1x8x8xf32> -> vector<1x8x8xf32>
    "tpu.trace_stop"() : () -> ()
    %cst_22 = arith.constant dense<0xFF800000> : vector<1x8xf32>
    %75 = vector.multi_reduction <maximumf>, %74, %cst_22 [2] : vector<1x8x8xf32> to vector<1x8xf32>
    %76 = vector.shape_cast %75 : vector<1x8xf32> to vector<1x8x1xf32>
    %77 = vector.broadcast %76 : vector<1x8x1xf32> to vector<1x8x8xf32>
    %78 = arith.subf %74, %77 : vector<1x8x8xf32>
    %79 = math.exp %78 : vector<1x8x8xf32>
    %cst_23 = arith.constant dense<0.000000e+00> : vector<1x8xf32>
    %80 = vector.multi_reduction <add>, %79, %cst_23 [2] : vector<1x8x8xf32> to vector<1x8xf32>
    %81 = vector.shape_cast %80 : vector<1x8xf32> to vector<1x8x1xf32>
    %82 = tpu.reciprocal %81 {approx = true} : vector<1x8x1xf32> -> vector<1x8x1xf32>
    %83 = vector.broadcast %82 : vector<1x8x1xf32> to vector<1x8x8xf32>
    %84 = arith.mulf %79, %83 : vector<1x8x8xf32>
    %85 = arith.truncf %84 : vector<1x8x8xf32> to vector<1x8x8xbf16>
    "tpu.trace_start"() <{level = 10 : i32, message = "bqk,bkd->bqd"}> : () -> ()
    %cst_24 = arith.constant dense<0.000000e+00> : vector<1x8x8xf32>
    %86 = tpu.matmul %85, %73, %cst_24 {dimension_numbers = #tpu.dot_dimension_numbers<[2], [1], [1], [2], [0, 0, 0, 1, 1, 2], [0], [0]>} : vector<1x8x8xbf16>, vector<1x8x8xbf16>, vector<1x8x8xf32> -> vector<1x8x8xf32>
    %cst_25 = arith.constant 0.000000e+00 : f32
    "tpu.trace_stop"() : () -> ()
    %87 = vector.broadcast %cst_25 : f32 to vector<1x8x96xf32>
    %88 = tpu.concatenate %38, %54, %70, %86, %87 in 2 : vector<1x8x8xf32>, vector<1x8x8xf32>, vector<1x8x8xf32>, vector<1x8x8xf32>, vector<1x8x96xf32> -> vector<1x8x128xf32>
    %89 = vector.shape_cast %88 : vector<1x8x128xf32> to vector<8x128xf32>
    %90 = arith.truncf %89 : vector<8x128xf32> to vector<8x128xbf16>
    %c0_26 = arith.constant 0 : index
    %c0_27 = arith.constant 0 : index
    %c0_28 = arith.constant 0 : index
    %91 = vector.load %arg5[%c0_26, %c0_27, %c0_28] : memref<1x128x128xbf16, #tpu.memory_space<vmem>>, vector<1x128x128xbf16>
    %92 = vector.shape_cast %91 : vector<1x128x128xbf16> to vector<128x128xbf16>
    %cst_29 = arith.constant dense<0.000000e+00> : vector<8x128xf32>
    %93 = tpu.matmul %90, %92, %cst_29 {dimension_numbers = #tpu.dot_dimension_numbers<[1], [0], [0], [1], [0, 0, 1, 1], [], []>} : vector<8x128xbf16>, vector<128x128xbf16>, vector<8x128xf32> -> vector<8x128xf32>
    %c0_30 = arith.constant 0 : index
    %c0_31 = arith.constant 0 : index
    %c0_32 = arith.constant 0 : index
    %94 = vector.load %arg6[%c0_30, %c0_31, %c0_32] : memref<1x1x128xf32, #tpu.memory_space<vmem>>, vector<1x1x128xf32>
    %95 = vector.shape_cast %94 : vector<1x1x128xf32> to vector<1x128xf32>
    %96 = vector.broadcast %95 : vector<1x128xf32> to vector<8x128xf32>
    %97 = arith.addf %93, %96 : vector<8x128xf32>
    %98 = arith.addf %3, %97 : vector<8x128xf32>
    %c0_33 = arith.constant 0 : index
    %c0_34 = arith.constant 0 : index
    %c0_35 = arith.constant 0 : index
    %99 = vector.load %arg11[%c0_33, %c0_34, %c0_35] : memref<1x1x128xf32, #tpu.memory_space<vmem>>, vector<1x1x128xf32>
    %100 = vector.shape_cast %99 : vector<1x1x128xf32> to vector<1x128xf32>
    %c0_36 = arith.constant 0 : index
    %c0_37 = arith.constant 0 : index
    %c0_38 = arith.constant 0 : index
    %101 = vector.load %arg12[%c0_36, %c0_37, %c0_38] : memref<1x1x128xf32, #tpu.memory_space<vmem>>, vector<1x1x128xf32>
    %102 = vector.shape_cast %101 : vector<1x1x128xf32> to vector<1x128xf32>
    %cst_39 = arith.constant dense<0.000000e+00> : vector<8xf32>
    %103 = vector.multi_reduction <add>, %98, %cst_39 [1] : vector<8x128xf32> to vector<8xf32>
    %104 = vector.shape_cast %103 : vector<8xf32> to vector<8x1xf32>
    %105 = arith.mulf %98, %98 : vector<8x128xf32>
    %cst_40 = arith.constant dense<0.000000e+00> : vector<8xf32>
    %106 = vector.multi_reduction <add>, %105, %cst_40 [1] : vector<8x128xf32> to vector<8xf32>
    %107 = vector.shape_cast %106 : vector<8xf32> to vector<8x1xf32>
    %cst_41 = arith.constant 3.125000e-02 : f32
    %108 = vector.broadcast %cst_41 : f32 to vector<8x1xf32>
    %109 = arith.mulf %104, %108 : vector<8x1xf32>
    %cst_42 = arith.constant 3.125000e-02 : f32
    %110 = vector.broadcast %cst_42 : f32 to vector<8x1xf32>
    %111 = arith.mulf %107, %110 : vector<8x1xf32>
    %112 = arith.mulf %109, %109 : vector<8x1xf32>
    %113 = arith.subf %111, %112 : vector<8x1xf32>
    %114 = vector.broadcast %109 : vector<8x1xf32> to vector<8x128xf32>
    %115 = arith.subf %98, %114 : vector<8x128xf32>
    %cst_43 = arith.constant 9.99999974E-6 : f32
    %116 = vector.broadcast %cst_43 : f32 to vector<8x1xf32>
    %117 = arith.addf %113, %116 : vector<8x1xf32>
    %118 = math.rsqrt %117 : vector<8x1xf32>
    %119 = vector.broadcast %118 : vector<8x1xf32> to vector<8x128xf32>
    %120 = arith.mulf %115, %119 : vector<8x128xf32>
    %121 = vector.broadcast %100 : vector<1x128xf32> to vector<8x128xf32>
    %122 = arith.mulf %120, %121 : vector<8x128xf32>
    %123 = vector.broadcast %102 : vector<1x128xf32> to vector<8x128xf32>
    %124 = arith.addf %122, %123 : vector<8x128xf32>
    %c0_44 = arith.constant 0 : index
    %c0_45 = arith.constant 0 : index
    %125 = vector.load %arg15[%c0_44, %c0_45] : memref<8x128xf32, #tpu.memory_space<vmem>>, vector<8x128xf32>
    tpu.vector_store %arg15[%c0_44, %c0_45], %124 {strides = array<i32>} : memref<8x128xf32, #tpu.memory_space<vmem>>, vector<8x128xf32>,
    %c0_46 = arith.constant 0 : index
    %c0_47 = arith.constant 0 : index
    %126 = vector.load %arg15[%c0_46, %c0_47] : memref<8x128xf32, #tpu.memory_space<vmem>>, vector<8x128xf32>
    %127 = arith.truncf %126 : vector<8x128xf32> to vector<8x128xbf16>
    %c0_48 = arith.constant 0 : index
    %c0_49 = arith.constant 0 : index
    %c0_50 = arith.constant 0 : index
    %128 = vector.load %arg7[%c0_48, %c0_49, %c0_50] : memref<1x128x128xbf16, #tpu.memory_space<vmem>>, vector<1x128x128xbf16>
    %129 = vector.shape_cast %128 : vector<1x128x128xbf16> to vector<128x128xbf16>
    %cst_51 = arith.constant dense<0.000000e+00> : vector<8x128xf32>
    %130 = tpu.matmul %127, %129, %cst_51 {dimension_numbers = #tpu.dot_dimension_numbers<[1], [0], [0], [1], [0, 0, 1, 1], [], []>} : vector<8x128xbf16>, vector<128x128xbf16>, vector<8x128xf32> -> vector<8x128xf32>
    %c0_52 = arith.constant 0 : index
    %c0_53 = arith.constant 0 : index
    %c0_54 = arith.constant 0 : index
    %131 = vector.load %arg8[%c0_52, %c0_53, %c0_54] : memref<1x1x128xf32, #tpu.memory_space<vmem>>, vector<1x1x128xf32>
    %132 = vector.shape_cast %131 : vector<1x1x128xf32> to vector<1x128xf32>
    %133 = vector.broadcast %132 : vector<1x128xf32> to vector<8x128xf32>
    %134 = arith.addf %130, %133 : vector<8x128xf32>
    %cst_55 = arith.constant 0.000000e+00 : f32
    %135 = vector.broadcast %cst_55 : f32 to vector<8x128xf32>
    %136 = arith.cmpf oge, %134, %135 : vector<8x128xf32>
    %cst_56 = arith.constant -0.00999999977 : f32
    %137 = vector.broadcast %cst_56 : f32 to vector<8x128xf32>
    %138 = arith.mulf %137, %134 : vector<8x128xf32>
    %139 = arith.select %136, %134, %138 : vector<8x128xi1>, vector<8x128xf32>
    %140 = arith.truncf %139 : vector<8x128xf32> to vector<8x128xbf16>
    %c0_57 = arith.constant 0 : index
    %c0_58 = arith.constant 0 : index
    %c0_59 = arith.constant 0 : index
    %141 = vector.load %arg9[%c0_57, %c0_58, %c0_59] : memref<1x128x128xbf16, #tpu.memory_space<vmem>>, vector<1x128x128xbf16>
    %142 = vector.shape_cast %141 : vector<1x128x128xbf16> to vector<128x128xbf16>
    %cst_60 = arith.constant dense<0.000000e+00> : vector<8x128xf32>
    %143 = tpu.matmul %140, %142, %cst_60 {dimension_numbers = #tpu.dot_dimension_numbers<[1], [0], [0], [1], [0, 0, 1, 1], [], []>} : vector<8x128xbf16>, vector<128x128xbf16>, vector<8x128xf32> -> vector<8x128xf32>
    %c0_61 = arith.constant 0 : index
    %c0_62 = arith.constant 0 : index
    %c0_63 = arith.constant 0 : index
    %144 = vector.load %arg10[%c0_61, %c0_62, %c0_63] : memref<1x1x128xf32, #tpu.memory_space<vmem>>, vector<1x1x128xf32>
    %145 = vector.shape_cast %144 : vector<1x1x128xf32> to vector<1x128xf32>
    %146 = vector.broadcast %145 : vector<1x128xf32> to vector<8x128xf32>
    %147 = arith.addf %143, %146 : vector<8x128xf32>
    %148 = arith.addf %126, %147 : vector<8x128xf32>
    %c0_64 = arith.constant 0 : index
    %c0_65 = arith.constant 0 : index
    %c0_66 = arith.constant 0 : index
    %149 = vector.load %arg13[%c0_64, %c0_65, %c0_66] : memref<1x1x128xf32, #tpu.memory_space<vmem>>, vector<1x1x128xf32>
    %150 = vector.shape_cast %149 : vector<1x1x128xf32> to vector<1x128xf32>
    %c0_67 = arith.constant 0 : index
    %c0_68 = arith.constant 0 : index
    %c0_69 = arith.constant 0 : index
    %151 = vector.load %arg14[%c0_67, %c0_68, %c0_69] : memref<1x1x128xf32, #tpu.memory_space<vmem>>, vector<1x1x128xf32>
    %152 = vector.shape_cast %151 : vector<1x1x128xf32> to vector<1x128xf32>
    %cst_70 = arith.constant dense<0.000000e+00> : vector<8xf32>
    %153 = vector.multi_reduction <add>, %148, %cst_70 [1] : vector<8x128xf32> to vector<8xf32>
    %154 = vector.shape_cast %153 : vector<8xf32> to vector<8x1xf32>
    %155 = arith.mulf %148, %148 : vector<8x128xf32>
    %cst_71 = arith.constant dense<0.000000e+00> : vector<8xf32>
    %156 = vector.multi_reduction <add>, %155, %cst_71 [1] : vector<8x128xf32> to vector<8xf32>
    %157 = vector.shape_cast %156 : vector<8xf32> to vector<8x1xf32>
    %cst_72 = arith.constant 3.125000e-02 : f32
    %158 = vector.broadcast %cst_72 : f32 to vector<8x1xf32>
    %159 = arith.mulf %154, %158 : vector<8x1xf32>
    %cst_73 = arith.constant 3.125000e-02 : f32
    %160 = vector.broadcast %cst_73 : f32 to vector<8x1xf32>
    %161 = arith.mulf %157, %160 : vector<8x1xf32>
    %162 = arith.mulf %159, %159 : vector<8x1xf32>
    %163 = arith.subf %161, %162 : vector<8x1xf32>
    %164 = vector.broadcast %159 : vector<8x1xf32> to vector<8x128xf32>
    %165 = arith.subf %148, %164 : vector<8x128xf32>
    %cst_74 = arith.constant 9.99999974E-6 : f32
    %166 = vector.broadcast %cst_74 : f32 to vector<8x1xf32>
    %167 = arith.addf %163, %166 : vector<8x1xf32>
    %168 = math.rsqrt %167 : vector<8x1xf32>
    %169 = vector.broadcast %168 : vector<8x1xf32> to vector<8x128xf32>
    %170 = arith.mulf %165, %169 : vector<8x128xf32>
    %171 = vector.broadcast %150 : vector<1x128xf32> to vector<8x128xf32>
    %172 = arith.mulf %170, %171 : vector<8x128xf32>
    %173 = vector.broadcast %152 : vector<1x128xf32> to vector<8x128xf32>
    %174 = arith.addf %172, %173 : vector<8x128xf32>
    %c0_75 = arith.constant 0 : index
    %c0_76 = arith.constant 0 : index
    %175 = vector.load %arg15[%c0_75, %c0_76] : memref<8x128xf32, #tpu.memory_space<vmem>>, vector<8x128xf32>
    tpu.vector_store %arg15[%c0_75, %c0_76], %174 {strides = array<i32>} : memref<8x128xf32, #tpu.memory_space<vmem>>, vector<8x128xf32>,
    return
  }
  func.func @transform_0(%arg0: i32, %arg1: i32) -> (i32, i32) {
    %c0_i32 = arith.constant 0 : i32
    %c0_i32_0 = arith.constant 0 : i32
    return %arg0, %c0_i32 : i32, i32
  }
  func.func @transform_1(%arg0: i32, %arg1: i32) -> (i32, i32, i32) {
    %c0_i32 = arith.constant 0 : i32
    %c0_i32_0 = arith.constant 0 : i32
    %c0_i32_1 = arith.constant 0 : i32
    return %arg1, %c0_i32, %c0_i32_0 : i32, i32, i32
  }
  func.func @transform_2(%arg0: i32, %arg1: i32) -> (i32, i32, i32) {
    %c0_i32 = arith.constant 0 : i32
    %c0_i32_0 = arith.constant 0 : i32
    %c0_i32_1 = arith.constant 0 : i32
    return %arg1, %c0_i32, %c0_i32_0 : i32, i32, i32
  }
  func.func @transform_3(%arg0: i32, %arg1: i32) -> (i32, i32, i32) {
    %c0_i32 = arith.constant 0 : i32
    %c0_i32_0 = arith.constant 0 : i32
    %c0_i32_1 = arith.constant 0 : i32
    return %arg1, %c0_i32, %c0_i32_0 : i32, i32, i32
  }
  func.func @transform_4(%arg0: i32, %arg1: i32) -> (i32, i32, i32) {
    %c0_i32 = arith.constant 0 : i32
    %c0_i32_0 = arith.constant 0 : i32
    %c0_i32_1 = arith.constant 0 : i32
    return %arg1, %c0_i32, %c0_i32_0 : i32, i32, i32
  }
  func.func @transform_5(%arg0: i32, %arg1: i32) -> (i32, i32, i32) {
    %c0_i32 = arith.constant 0 : i32
    %c0_i32_0 = arith.constant 0 : i32
    %c0_i32_1 = arith.constant 0 : i32
    return %arg1, %c0_i32, %c0_i32_0 : i32, i32, i32
  }
  func.func @transform_6(%arg0: i32, %arg1: i32) -> (i32, i32, i32) {
    %c0_i32 = arith.constant 0 : i32
    %c0_i32_0 = arith.constant 0 : i32
    %c0_i32_1 = arith.constant 0 : i32
    return %arg1, %c0_i32, %c0_i32_0 : i32, i32, i32
  }
  func.func @transform_7(%arg0: i32, %arg1: i32) -> (i32, i32, i32) {
    %c0_i32 = arith.constant 0 : i32
    %c0_i32_0 = arith.constant 0 : i32
    %c0_i32_1 = arith.constant 0 : i32
    return %arg1, %c0_i32, %c0_i32_0 : i32, i32, i32
  }
  func.func @transform_8(%arg0: i32, %arg1: i32) -> (i32, i32, i32) {
    %c0_i32 = arith.constant 0 : i32
    %c0_i32_0 = arith.constant 0 : i32
    %c0_i32_1 = arith.constant 0 : i32
    return %arg1, %c0_i32, %c0_i32_0 : i32, i32, i32
  }
  func.func @transform_9(%arg0: i32, %arg1: i32) -> (i32, i32, i32) {
    %c0_i32 = arith.constant 0 : i32
    %c0_i32_0 = arith.constant 0 : i32
    %c0_i32_1 = arith.constant 0 : i32
    return %arg1, %c0_i32, %c0_i32_0 : i32, i32, i32
  }
  func.func @transform_10(%arg0: i32, %arg1: i32) -> (i32, i32, i32) {
    %c0_i32 = arith.constant 0 : i32
    %c0_i32_0 = arith.constant 0 : i32
    %c0_i32_1 = arith.constant 0 : i32
    return %arg1, %c0_i32, %c0_i32_0 : i32, i32, i32
  }
  func.func @transform_11(%arg0: i32, %arg1: i32) -> (i32, i32, i32) {
    %c0_i32 = arith.constant 0 : i32
    %c0_i32_0 = arith.constant 0 : i32
    %c0_i32_1 = arith.constant 0 : i32
    return %arg1, %c0_i32, %c0_i32_0 : i32, i32, i32
  }
  func.func @transform_12(%arg0: i32, %arg1: i32) -> (i32, i32, i32) {
    %c0_i32 = arith.constant 0 : i32
    %c0_i32_0 = arith.constant 0 : i32
    %c0_i32_1 = arith.constant 0 : i32
    return %arg1, %c0_i32, %c0_i32_0 : i32, i32, i32
  }
  func.func @transform_13(%arg0: i32, %arg1: i32) -> (i32, i32) {
    %c0_i32 = arith.constant 0 : i32
    %c0_i32_0 = arith.constant 0 : i32
    return %arg0, %c0_i32 : i32, i32
  }
}

</mosaic_0001>

<bundles_post_ra>
// kernel: tpu_custom_call.1
= control target key start
LH: loop header
LB: loop body
LE: loop exit
PB: predicated region body
PF: predicated region fallthrough
CT: control target
= control target key end

     0   :  { %s3678_s0 = inlined_call_operand.hbm [shape: f32[16,128], index: 0, kind: input, shape index: {}]   ;;  %s3679_s1 = inlined_call_operand.hbm [shape: bf16[2,128,384], index: 1, kind: input, shape index: {}]   ;;  %s3680_s2 = inlined_call_operand.vmem [shape: f32[2,1,384], index: 2, kind: input, shape index: {}]   ;;  %s3681_s3 = inlined_call_operand.hbm [shape: bf16[2,128,128], index: 3, kind: input, shape index: {}]   ;;  %s3682_s4 = inlined_call_operand.vmem [shape: f32[2,1,128], index: 4, kind: input, shape index: {}]   ;;  %s3683_s5 = inlined_call_operand.hbm [shape: bf16[2,128,128], index: 5, kind: input, shape index: {}]   ;;  %s3684_s6 = inlined_call_operand.vmem [shape: f32[2,1,128], index: 6, kind: input, shape index: {}]   ;;  %s3685_s7 = inlined_call_operand.hbm [shape: bf16[2,128,128], index: 7, kind: input, shape index: {}]   ;;  %s3686_s8 = inlined_call_operand.vmem [shape: f32[2,1,128], index: 8, kind: input, shape index: {}]   ;;  %s3687_s9 = inlined_call_operand.vmem [shape: f32[2,1,128], index: 9, kind: input, shape index: {}]   ;;  %s3688_s10 = inlined_call_operand.vmem [shape: f32[2,1,128], index: 10, kind: input, shape index: {}]   ;;  %s3689_s11 = inlined_call_operand.vmem [shape: f32[2,1,128], index: 11, kind: input, shape index: {}]   ;;  %s3690_s12 = inlined_call_operand.vmem [shape: f32[2,1,128], index: 12, kind: input, shape index: {}]   ;;  %s3691_s13 = inlined_call_operand.hbm [shape: f32[16,128], index: 13, kind: output, shape index: {}]  }
   0x1   :  { %3721 = sst [smem:[#allocation32_spill]] %s3678_s0 }
   0x2   :  { %3722 = sst [smem:[#allocation33_spill]] %s3679_s1 }
   0x3   :  { %3723 = sst [smem:[#allocation34_spill]] %s3680_s2 }
   0x4   :  { %3724 = sst [smem:[#allocation35_spill]] %s3681_s3 }
   0x5   :  { %3725 = sst [smem:[#allocation36_spill]] %s3682_s4 }
   0x6   :  { %3726 = sst [smem:[#allocation37_spill]] %s3683_s5 }
   0x7   :  { %3727 = sst [smem:[#allocation38_spill]] %s3684_s6 }
   0x8   :  { %3728 = sst [smem:[#allocation39_spill]] %s3685_s7 }
   0x9   :  { %3729 = sst [smem:[#allocation40_spill]] %s3686_s8 }
   0xa   :  { %3730 = sst [smem:[#allocation41_spill]] %s3687_s9 }
   0xb   :  { %3731 = sst [smem:[#allocation42_spill]] %s3688_s10 }
   0xc   :  { %3732 = sst [smem:[#allocation43_spill]] %s3689_s11 }
   0xd   :  { %3733 = sst [smem:[#allocation44_spill]] %s3690_s12 }
   0xe   :  { %3734 = sst [smem:[#allocation45_spill]] %s3691_s13 }
   0xf   :  { %18 = vsyncpa [#allocation3], 0 }
  0x10   :  { %20 = vsyncpa [#allocation3 + $0x1], 0 }
  0x11   :  { %21 = vsyncpa [#allocation6], 0 }
  0x12   :  { %23 = vsyncpa [#allocation6 + $0x1], 0 }
  0x13   :  { %24 = vsyncpa [#allocation9], 0 }
  0x14   :  { %26 = vsyncpa [#allocation9 + $0x1], 0 }
  0x15   :  { %27 = vsyncpa [#allocation4], 0 }
  0x16   :  { %29 = vsyncpa [#allocation4 + $0x1], 0  ;;  %s2986_s25 = smov 0   ;;  %s2988_s26 = smov 0  }
  0x17   :  { %s2990_s27 = smov 0   ;;  %s2992_s28 = smov 0  }
  0x18   :  { %s2994_s29 = smov 0   ;;  %s2996_s30 = smov 0  }
  0x19   :  { %s2998_s14 = smov 0   ;;  %s3000_s15 = smov 0  }
  0x1a   :  { %s3002_s16 = smov 0   ;;  %s3004_s17 = smov 0  }
  0x1b   :  { %s3006_s18 = smov 0  }
  0x1c LB: > { %3735 = sst [smem:[#allocation16_spill]] %s2859_s26  ;;  %p3695_p0 = scmp.eq.s32.totalorder %s2895_s18, 0  ;;  %s2895_s18 = sphi %s3006_s18, %s35_s18   ;;  %s2891_s17 = sphi %s3004_s17, %s3819_s17   ;;  %s2887_s16 = sphi %s3002_s16, %s3818_s16   ;;  %s2883_s15 = sphi %s3000_s15, %s3817_s15   ;;  %s2879_s14 = sphi %s2998_s14, %s3816_s14   ;;  %s2875_s30 = sphi %s2996_s30, %s3815_s30   ;;  %s2871_s29 = sphi %s2994_s29, %s3814_s29   ;;  %s2867_s28 = sphi %s2992_s28, %s3813_s28   ;;  %s2863_s27 = sphi %s2990_s27, %s3812_s27   ;;  %s2859_s26 = sphi %s2988_s26, %s3811_s26   ;;  %s2855_s25 = sphi %s2986_s25, %s3810_s25  }
  0x1d   : > { %3736 = sst [smem:[#allocation17_spill]] %s2863_s27  ;;  %p87_p1 = scmp.ne.s32.totalorder %s2863_s27, %s2859_s26 }
  0x1e   : > { %3737 = sst [smem:[#allocation18_spill]] %s2867_s28  ;;  %p3694_p4 = scmp.lt.s32.totalorder %s2895_s18, 4 }
  0x1f   : > { %3738 = sst [smem:[#allocation19_spill]] %s2871_s29  ;;  %p89_p3 = por %p87_p1, %p3695_p0 }
  0x20   : > { %3739 = sst [smem:[#allocation20_spill]] %s2875_s30  ;;  %s3693_s22 = sand.u32 1, %s2863_s27  }
  0x21   : > { %3740 = sst [smem:[#allocation21_spill]] %s2879_s14  ;;  %s2400_s23 = smul.u32 192, %s3693_s22 }
  0x22   : > { %3741 = sst [smem:[#allocation22_spill]] %s2883_s15  ;;  %s2401_s24 = smul.u32 3072, %s2887_s16 }
  0x23   : > { %3742 = sst [smem:[#allocation23_spill]] %s2887_s16  ;;  %p3058_p5 = pnand %p3694_p4, %p89_p3 }
  0x24   : > { %3743 = sst [smem:[#allocation24_spill]] %s2891_s17  ;;  %s3746_s1 = sld [smem:[#allocation33_spill]] }
  0x25   : > { %3744 = sst [smem:[#allocation25_spill]] %s2895_s18  ;;  %s451_s21 = scalar_lea.vmem [#allocation5], %s2400_s23 }
  0x26   : > { %s3745_s13 = scalar_select %p3058_p5, 1, 0 }
  0x27   : > { %s458_s12 = sshll.u32 %s451_s21, 4  ;;  %s3747_s22 = sand.u32 1, %s2895_s18   ;;  %s3067_s12 = int_to_ptr.vmem [resolvable:$true] %s458_s12 }
  0x28   : > { %s3072_s11 = scalar_lea.sflag [#allocation6], %s3747_s22  ;;  %p3078_p8 = pneg %p3058_p5 }
  0x2a   : > { %s3065_s20 = scalar_lea.hbm %s3746_s1, %s2401_s24  ;;  %s2620_s21 = scalar_lea.hbm %s3746_s1, 6144 }
  0x2b   : > { %s2615_s10 = scalar_lea.hbm %s3065_s20, 3072  ;;  %p2621_p11 = scmp.lt.u32.totalorder %s3065_s20, %s3746_s1 }
  0x2c   : > { %p2616_p7 = scmp.ne.s32.totalorder %s3065_s20, %s2615_s10  ;;  %p2622_p12 = scmp.lt.u32.totalorder %s2620_s21, %s2615_s10 }
  0x2d   : > { %p2624_p1 = scmp.lt.u32.totalorder %s2615_s10, %s3065_s20 }
  0x2e   : > { %p2618_p9 = pnand %p3078_p8, %p2616_p7  ;;  %p2623_p13 = por %p2622_p12, %p2621_p11 }
  0x30   : > { %p2619_p10 = pneg %p2618_p9  ;;  %p2625_p3 = por %p2624_p1, %p2623_p13 }
  0x32   : > { %p2626_p4 = pnand %p2625_p3, %p2619_p10 }
  0x34   : > { %2629 = shalt.err (!%p2626_p4)
}
  0x35   : > { %s2630_s22 = scalar_lea.vmem %s3067_s12, 3072  ;;  %s2897_s19 = smov [#allocation5]  }
  0x36   : > { %p2631_p7 = scmp.ne.s32.totalorder %s3067_s12, %s2630_s22  ;;  %s2635_s23 = sshll.u32 %s2897_s19, 4  ;;  %s2636_s23 = int_to_ptr.vmem [resolvable:$false] %s2635_s23 }
  0x37   : > { %s2637_s9 = scalar_lea.vmem %s2636_s23, 6144  ;;  %p2638_p0 = scmp.lt.s32.totalorder %s3067_s12, %s2636_s23 }
  0x38   : > { %p2633_p9 = pnand %p2631_p7, %p3078_p8  ;;  %p2639_p6 = scmp.lt.s32.totalorder %s2637_s9, %s2630_s22 }
  0x3a   : > { %p2634_p2 = pneg %p2633_p9  ;;  %p2640_p11 = por %p2639_p6, %p2638_p0 }
  0x3c   : > { %p2641_p12 = pnand %p2640_p11, %p2634_p2 }
  0x3e   : > { %2644 = shalt.err (!%p2641_p12)
}
  0x3f   : > { %s2898_s10 = smov 192   ;;  %s2899_s21 = smov 12  }
  0x40   : > { %2422 = dma.hbm_to_vmem [thread:$0]  (!%p3058_p5), %s3065_s20, 3072, %s3067_s12, %s3072_s11, %s2898_s10, %s2898_s10, %s2899_s21  }
  0x41   : > { %p578_p4 = scmp.lt.s32.totalorder %s2895_s18, 5  ;;  %s3749_s24 = sand.u32 1, %s2863_s27  }
  0x42   : > { %s3105_s22 = sshll.u32 %s3749_s24, 6  ;;  %s3108_s19 = sshll.u32 %s2887_s16, 10 }
  0x43   : > { %p3750_p0 = scmp.ge.s32.totalorder %s2895_s18, 1  ;;  %s3752_s5 = sld [smem:[#allocation37_spill]] }
  0x44   : > { %s506_s12 = scalar_lea.vmem [#allocation8], %s3105_s22  ;;  %s3753_s10 = sand.u32 1, %s2895_s18  }
  0x45   : > { %p3112_p2 = pnand %p3750_p0, %p578_p4  ;;  %s513_s20 = sshll.u32 %s506_s12, 4  ;;  %s3123_s20 = int_to_ptr.vmem [resolvable:$true] %s513_s20 }
  0x46   : > { %s3127_s21 = scalar_lea.sflag [#allocation9], %s3753_s10 }
  0x47   : > { %s3751_s23 = scalar_select %p3112_p2, 1, 0 }
  0x49   : > { %s3120_s2 = scalar_lea.hbm %s3752_s5, %s3108_s19  ;;  %s2650_s9 = scalar_lea.hbm %s3752_s5, 2048 }
  0x4a   : > { %s2645_s24 = scalar_lea.hbm %s3120_s2, 1024  ;;  %p2651_p1 = scmp.lt.u32.totalorder %s3120_s2, %s3752_s5 }
  0x4b   : > { %p2646_p6 = scmp.ne.s32.totalorder %s3120_s2, %s2645_s24  ;;  %p2652_p3 = scmp.lt.u32.totalorder %s2650_s9, %s2645_s24 }
  0x4c   : > { %p2654_p9 = scmp.lt.u32.totalorder %s2645_s24, %s3120_s2 }
  0x4d   : > { %p2648_p10 = pnand %p2646_p6, %p3078_p8  ;;  %p2653_p7 = por %p2652_p3, %p2651_p1 }
  0x4f   : > { %p2649_p13 = pneg %p2648_p10  ;;  %p2655_p11 = por %p2654_p9, %p2653_p7 }
  0x51   : > { %p2656_p12 = pnand %p2655_p11, %p2649_p13 }
  0x53   : > { %2659 = shalt.err (!%p2656_p12)
}
  0x54   : > { %s2660_s12 = scalar_lea.vmem %s3123_s20, 1024  ;;  %s2900_s8 = smov [#allocation8]  }
  0x55   : > { %p2661_p4 = scmp.ne.s32.totalorder %s3123_s20, %s2660_s12  ;;  %s2665_s10 = sshll.u32 %s2900_s8, 4  ;;  %s2666_s10 = int_to_ptr.vmem [resolvable:$false] %s2665_s10 }
  0x56   : > { %s2667_s4 = scalar_lea.vmem %s2666_s10, 2048  ;;  %p2668_p10 = scmp.lt.s32.totalorder %s3123_s20, %s2666_s10 }
  0x57   : > { %p2663_p0 = pnand %p2661_p4, %p3078_p8  ;;  %p2669_p2 = scmp.lt.s32.totalorder %s2667_s4, %s2660_s12 }
  0x59   : > { %p2664_p6 = pneg %p2663_p0  ;;  %p2670_p1 = por %p2669_p2, %p2668_p10 }
  0x5b   : > { %p2671_p3 = pnand %p2670_p1, %p2664_p6 }
  0x5d   : > { %2674 = shalt.err (!%p2671_p3)
}
  0x5e   : > { %s3696_s6 = smov 64   ;;  %s3698_s24 = smov 4  }
  0x5f   : > { %2428 = dma.hbm_to_vmem [thread:$0]  (!%p3058_p5), %s3120_s2, 1024, %s3123_s20, %s3127_s21, %s3696_s6, %s3696_s6, %s3698_s24  }
  0x60   : > { %s3155_s1 = sadd.s32 4294967295, %s2895_s18   ;;  %s2125_s9 = sadd.s32 4294967294, %s2895_s18  }
  0x61   : > { %s3754_s12 = sadd.s32 1, %s2887_s16  ;;  %s47_s8 = sadd.s32 1, %s2891_s17 }
  0x62   : > { %p45_p2 = scmp.ge.s32.totalorder %s3754_s12, 2  ;;  %s54_s10 = sadd.s32 1, %s2875_s30 }
  0x63   : > { %s3755_s4 = smov %s3754_s12  ;;  %p61_p13 = scmp.ne.s32.totalorder %s2875_s30, %s2871_s29 }
  0x64   : > { %s3821_s4 = smov (%p45_p2, %s3755_s4), 0  ;;  %s3823_s8 = smov (!%p45_p2, %s47_s8), %s2891_s17 }
  0x65   : > { %3756 = sst [smem:[#allocation26_spill]] %s3821_s4  ;;  %p67_p7 = scmp.ne.s32.totalorder %s2871_s29, %s2867_s28 }
  0x66   : > { %p49_p9 = scmp.ge.s32.totalorder %s3823_s8, 2  ;;  %p68_p11 = scmp.eq.s32.totalorder %s3155_s1, 0 }
  0x67   : > { %p3757_p12 = scmp.eq.s32.totalorder %s2895_s18, 0  ;;  %s77_s20 = ssub.s32 %s2887_s16, %s3821_s4 }
  0x68   : > { %s3825_s8 = smov (%p49_p9, %s3823_s8), 0  ;;  %p3188_p0 = por %p68_p11, %p67_p7 }
  0x69   : > { %p3177_p4 = por %p3757_p12, %p61_p13  ;;  %3759 = sst [smem:[#allocation27_spill]] %s3825_s8 }
  0x6a   : > { %s3760_s12 = scalar_select %p3188_p0, 1, 0 }
  0x6b   : > { %p78_p6 = scmp.eq.s32.totalorder %s77_s20, 0  ;;  %s51_s6 = ssub.s32 %s2891_s17, %s3825_s8 }
  0x6c   : > { %p3761_p10 = scmp.ne.s32.totalorder %s2859_s26, %s2855_s25  ;;  %p52_p3 = scmp.eq.s32.totalorder %s51_s6, 0 }
  0x6d   : > { %p403_p2 = scmp.eq.s32.totalorder %s3155_s1, 3  ;;  %s3764_s5 = sadd.s32 1, %s2863_s27 }
  0x6e   : > { %p3197_p1 = por %p3761_p10, %p68_p11  ;;  %p409_p12 = scmp.eq.s32.totalorder %s2125_s9, 3 }
  0x6f   : > { %s3205_s4 = scalar_select %p78_p6, %s2863_s27, %s3764_s5  }
  0x70   : > { %s3762_s24 = scalar_select %p3197_p1, 1, 0 }
  0x71   : > { %3765 = sst [smem:[#allocation29_spill]] %s3205_s4  ;;  %p3213_p9 = por %p403_p2, %p61_p13 }
  0x72   : > { %3763 = sst [smem:[#allocation28_spill]] %s3762_s24  ;;  %s429_s20 = sand.u32 1, %s2875_s30  }
  0x73   : > { %s3208_s16 = scalar_select %p52_p3, %s2875_s30, %s54_s10  }
  0x74   : > { %s3767_s14 = scalar_select %p3213_p9, 1, 0 }
  0x75   : > { %3766 = sst [smem:[#allocation30_spill]] %s3208_s16  ;;  %s2129_s8 = sshll.u32 %s2891_s17, 7 }
  0x76   : > { %p3222_p11 = por %p409_p12, %p67_p7  ;;  %s2128_s6 = sshll.u32 %s429_s20, 3 }
  0x77   : > { %s3770_s0 = sld [smem:[#allocation32_spill]]  ;;  %p3771_p6 = scmp.lt.s32.totalorder %s2895_s18, 4 }
  0x78   : > { %s3768_s25 = scalar_select %p3222_p11, 1, 0 }
  0x79   : > { %p3235_p13 = pnand %p3771_p6, %p3177_p4  ;;  %s433_s10 = scalar_lea.vmem [#allocation2], %s2128_s6 }
  0x7a   : > { %3769 = sst [smem:[#allocation31_spill]] %s3768_s25  ;;  %s440_s17 = sshll.u32 %s433_s10, 4  ;;  %s3239_s17 = int_to_ptr.vmem [resolvable:$true] %s440_s17 }
  0x7b   : > { %s430_s16 = scalar_lea.sflag [#allocation3], %s429_s20  ;;  %p2677_p10 = pneg %p3235_p13 }
  0x7d   : > { %s3229_s5 = scalar_lea.hbm %s3770_s0, %s2129_s8  ;;  %s2680_s2 = scalar_lea.hbm %s3770_s0, 256 }
  0x7e   : > { %s2675_s26 = scalar_lea.hbm %s3229_s5, 128  ;;  %p2681_p4 = scmp.lt.u32.totalorder %s3229_s5, %s3770_s0 }
  0x7f   : > { %p2676_p7 = scmp.ne.s32.totalorder %s3229_s5, %s2675_s26  ;;  %p2682_p12 = scmp.lt.u32.totalorder %s2680_s2, %s2675_s26 }
  0x80   : > { %p2684_p11 = scmp.lt.u32.totalorder %s2675_s26, %s3229_s5 }
  0x81   : > { %p2678_p3 = pnand %p2677_p10, %p2676_p7  ;;  %p2683_p6 = por %p2682_p12, %p2681_p4 }
  0x83   : > { %p2679_p2 = pneg %p2678_p3  ;;  %p2685_p9 = por %p2684_p11, %p2683_p6 }
  0x85   : > { %p2686_p1 = pnand %p2685_p9, %p2679_p2 }
  0x87   : > { %2689 = shalt.err (!%p2686_p1)
}
  0x88   : > { %s2690_s20 = scalar_lea.vmem %s3239_s17, 128  ;;  %s2903_s6 = smov [#allocation2]  }
  0x89   : > { %p2691_p7 = scmp.ne.s32.totalorder %s3239_s17, %s2690_s20  ;;  %s2695_s10 = sshll.u32 %s2903_s6, 4  ;;  %s2696_s10 = int_to_ptr.vmem [resolvable:$false] %s2695_s10 }
  0x8a   : > { %s2697_s30 = scalar_lea.vmem %s2696_s10, 256  ;;  %p2698_p5 = scmp.lt.s32.totalorder %s3239_s17, %s2696_s10 }
  0x8b   : > { %p2693_p3 = pnand %p2691_p7, %p2677_p10  ;;  %p2699_p4 = scmp.lt.s32.totalorder %s2697_s30, %s2690_s20 }
  0x8d   : > { %p2694_p0 = pneg %p2693_p3  ;;  %p2700_p12 = por %p2699_p4, %p2698_p5 }
  0x8f   : > { %p2701_p11 = pnand %p2700_p12, %p2694_p0 }
  0x91   : > { %2704 = shalt.err (!%p2701_p11)
}
  0x92   : > { %2419 = dma.hbm_to_vmem [thread:$0]  (!%p3235_p13), %s3229_s5, 128, %s3239_s17, %s430_s16  }
  0x93   : > { %s3773_s3 = sld [smem:[#allocation35_spill]]  ;;  %s479_s8 = scalar_lea.vmem [#allocation7], %s3105_s22 }
  0x94   : > { %s486_s2 = sshll.u32 %s479_s8, 4  ;;  %s3273_s2 = int_to_ptr.vmem [resolvable:$true] %s486_s2 }
  0x99   : > { %s3270_s24 = scalar_lea.hbm %s3773_s3, %s3108_s19  ;;  %s2710_s17 = scalar_lea.hbm %s3773_s3, 2048 }
  0x9a   : > { %s2705_s9 = scalar_lea.hbm %s3270_s24, 1024  ;;  %p2711_p9 = scmp.lt.u32.totalorder %s3270_s24, %s3773_s3 }
  0x9b   : > { %p2706_p5 = scmp.ne.s32.totalorder %s3270_s24, %s2705_s9  ;;  %p2712_p13 = scmp.lt.u32.totalorder %s2710_s17, %s2705_s9 }
  0x9c   : > { %p2714_p2 = scmp.lt.u32.totalorder %s2705_s9, %s3270_s24 }
  0x9d   : > { %p2708_p0 = pnand %p2706_p5, %p3078_p8  ;;  %p2713_p10 = por %p2712_p13, %p2711_p9 }
  0x9f   : > { %p2709_p1 = pneg %p2708_p0  ;;  %p2715_p6 = por %p2714_p2, %p2713_p10 }
  0xa1   : > { %p2716_p7 = pnand %p2715_p6, %p2709_p1 }
  0xa3   : > { %2719 = shalt.err (!%p2716_p7)
}
  0xa4   : > { %s2720_s10 = scalar_lea.vmem %s3273_s2, 1024  ;;  %s2904_s30 = smov [#allocation7]  }
  0xa5   : > { %p2721_p3 = scmp.ne.s32.totalorder %s3273_s2, %s2720_s10  ;;  %s2725_s4 = sshll.u32 %s2904_s30, 4  ;;  %s2726_s4 = int_to_ptr.vmem [resolvable:$false] %s2725_s4 }
  0xa6   : > { %s2727_s26 = scalar_lea.vmem %s2726_s4, 2048  ;;  %p2728_p11 = scmp.lt.s32.totalorder %s3273_s2, %s2726_s4 }
  0xa7   : > { %p2723_p4 = pnand %p2721_p3, %p3078_p8  ;;  %p2729_p5 = scmp.lt.s32.totalorder %s2727_s26, %s2720_s10 }
  0xa9   : > { %p2724_p12 = pneg %p2723_p4  ;;  %p2730_p0 = por %p2729_p5, %p2728_p11 }
  0xab   : > { %p2731_p9 = pnand %p2730_p0, %p2724_p12 }
  0xad   : > { %2734 = shalt.err (!%p2731_p9)
}
  0xae   : > { %p3774_p1 = scmp.ne.s32.totalorder %s3745_s13, 0  ;;  %s3775_s8 = smov 4  }
  0xaf   : > { %s3776_s9 = smov 64   ;;  %s3777_s7 = sld [smem:[#allocation39_spill]] }
  0xb0   : > { %2425 = dma.hbm_to_vmem [thread:$0]  (!%p3774_p1), %s3270_s24, 1024, %s3273_s2, %s3072_s11, %s3776_s9, %s3776_s9, %s3775_s8  }
  0xb1   : > { %s533_s5 = scalar_lea.vmem [#allocation10], %s3105_s22 }
  0xb2   : > { %s540_s6 = sshll.u32 %s533_s5, 4  ;;  %s3307_s6 = int_to_ptr.vmem [resolvable:$true] %s540_s6 }
  0xb5   : > { %s3304_s17 = scalar_lea.hbm %s3777_s7, %s3108_s19  ;;  %s2740_s24 = scalar_lea.hbm %s3777_s7, 2048 }
  0xb6   : > { %s2735_s10 = scalar_lea.hbm %s3304_s17, 1024  ;;  %p2741_p6 = scmp.lt.u32.totalorder %s3304_s17, %s3777_s7 }
  0xb7   : > { %p2736_p13 = scmp.ne.s32.totalorder %s3304_s17, %s2735_s10  ;;  %p2742_p7 = scmp.lt.u32.totalorder %s2740_s24, %s2735_s10 }
  0xb8   : > { %p2744_p4 = scmp.lt.u32.totalorder %s2735_s10, %s3304_s17 }
  0xb9   : > { %p2738_p10 = pnand %p2736_p13, %p3078_p8  ;;  %p2743_p3 = por %p2742_p7, %p2741_p6 }
  0xbb   : > { %p2739_p2 = pneg %p2738_p10  ;;  %p2745_p12 = por %p2744_p4, %p2743_p3 }
  0xbd   : > { %p2746_p11 = pnand %p2745_p12, %p2739_p2 }
  0xbf   : > { %2749 = shalt.err (!%p2746_p11)
}
  0xc0   : > { %s2750_s22 = scalar_lea.vmem %s3307_s6, 1024  ;;  %s2905_s4 = smov [#allocation10]  }
  0xc1   : > { %p2751_p5 = scmp.ne.s32.totalorder %s3307_s6, %s2750_s22  ;;  %s2755_s26 = sshll.u32 %s2905_s4, 4  ;;  %s2756_s26 = int_to_ptr.vmem [resolvable:$false] %s2755_s26 }
  0xc2   : > { %s2757_s20 = scalar_lea.vmem %s2756_s26, 2048  ;;  %p2758_p13 = scmp.lt.s32.totalorder %s3307_s6, %s2756_s26 }
  0xc3   : > { %p2753_p0 = pnand %p2751_p5, %p3078_p8  ;;  %p2759_p10 = scmp.lt.s32.totalorder %s2757_s20, %s2750_s22 }
  0xc5   : > { %p2754_p9 = pneg %p2753_p0  ;;  %p2760_p6 = por %p2759_p10, %p2758_p13 }
  0xc7   : > { %p2761_p7 = pnand %p2760_p6, %p2754_p9 }
  0xc9   : > { %2764 = shalt.err (!%p2761_p7)
}
  0xca   : > { %2431 = dma.hbm_to_vmem [thread:$0]  (!%p3774_p1), %s3304_s17, 1024, %s3307_s6, %s3127_s21, %s3776_s9, %s3776_s9, %s3775_s8  }
  0xcb   : > { %p3778_p8 = scmp.ne.s32.totalorder %s3751_s23, 0 }
  0xcc   : > { %s3337_s15 = sand.u32 (!%p3778_p8), 1, %s2871_s29   ;;  %p3779_p2 = scmp.ne.s32.totalorder (!%p3778_p8), %s3760_s12, 0 }
  0xcd   : > { %582 = sbr.rel (%p3778_p8) target bundleno = 2921 (0xb69), region = 72  ;;  %s3714_s16 = sshll.u32 (!%p3778_p8), %s3337_s15, 3 }
  0xce   : > { %s585_s5 = scalar_lea.sflag (!%p3778_p8), [#allocation3], %s3337_s15  ;;  %s3343_s13 = scalar_lea.vmem (!%p3778_p8), [#allocation2], %s3714_s16 }
  0xd4   : > { %2838 = dma.done.wait (%p3779_p2), %s585_s5, 128  }
  0xd5   : > { %2840 = vsyncadd (%p3779_p2), %s585_s5, 4294967168  ;;  %s3780_s23 = sld [smem:[#allocation16_spill]]  ;;  %s3781_s21 = sld [smem:[#allocation28_spill]] }
  0xd6   : > { %s593_s8 = sand.u32 1, %s3155_s1  }
  0xd7   : > { %s594_s6 = scalar_lea.sflag [#allocation6], %s593_s8 }
  0xdb   : > { %s595_s9 = sand.u32 1, %s3780_s23   ;;  %p3782_p1 = scmp.ne.s32.totalorder %s3781_s21, 0 }
  0xdc   : > { %s2402_s17 = smul.u32 192, %s595_s9 }
  0xde   : > { %s3351_s10 = scalar_lea.vmem [#allocation5], %s2402_s17 }
  0xdf   : > { %2842 = dma.done.wait (%p3782_p1), %s594_s6, 4096  }
  0xe0   : > { %2844 = vsyncadd (%p3782_p1), %s594_s6, 4294963200  ;;  %s2142_s30 = sshll.u32 %s595_s9, 6  ;;  %s612_s12 = scalar_lea.sflag [#allocation9], %s593_s8 }
  0xe1   : > { %s3357_s11 = scalar_lea.vmem [#allocation7], %s2142_s30  ;;  %s3359_s24 = scalar_lea.vmem [#allocation8], %s2142_s30 }
  0xe2   : > { %2846 = dma.done.wait (%p3782_p1), %s612_s12, 2048  }
  0xe3   : > { %2848 = vsyncadd (%p3782_p1), %s612_s12, 4294965248  ;;  %s3783_s1 = sld [smem:[#allocation21_spill]]  ;;  %s3787_s3 = sld [smem:[#allocation34_spill]] }
  0xe4   : > { %s3788_s25 = sld [smem:[#allocation41_spill]]  ;;  %s3789_s4 = sld [smem:[#allocation42_spill]] }
  0xe5   : > { %s3790_s23 = sld [smem:[#allocation43_spill]]  ;;  %s3791_s17 = sld [smem:[#allocation44_spill]] }
  0xe6   : > { %s3403_s12 = scalar_lea.vmem [#allocation10], %s2142_s30  ;;  %s3792_s0 = sshll.u32 %s3337_s15, 3 }
  0xe9   : > { %p712_p3 = scmp.lt.s32.totalorder %s3783_s1, 1  ;;  %p2146_p4 = scmp.ne.s32.totalorder %s3783_s1, 0 }
  0xea   : > { %v742_v0 = vld [vmem:[%s3343_s13] sm:$0xff] (!%p2146_p4) }
  0xeb   : > { %s3367_s2 = scalar_select %p712_p3, %s3783_s1, 1 }
  0xec   : > { %741 = sbr.rel (%p2146_p4) target bundleno = 243 (0xf3), region = 96 }
  0xed   : > { %s2403_s19 = smul.u32 3, %s3367_s2  ;;  %s727_s28 = scalar_lea.vmem %s3788_s25, %s3367_s2 }
  0xee   : > { %s730_s26 = scalar_lea.vmem %s3789_s4, %s3367_s2  ;;  %s733_s21 = scalar_lea.vmem %s3790_s23, %s3367_s2 }
  0xef   : > { %s3385_s7 = scalar_lea.vmem %s3787_s3, %s2403_s19  ;;  %s736_s6 = scalar_lea.vmem %s3791_s17, %s3367_s2 }
  0xf0   : > { %s3407_s3 = scalar_lea.vmem [#allocation11], %s3792_s0 }
  0xf1   : > { %743 = vst [vmem:[%s3407_s3] sm:$0xff] (!%p2146_p4), %v742_v0 }
  0xf3 PF: > { %v2539_v1 = vld [vmem:[%s3351_s10 + $0x4] ss:$12 sps:$4 sm:$0xff]   ;;  %v2541_v2 = vld [vmem:[%s3351_s10] ss:$12 sps:$4 sm:$0xff]   ;;  %v2906_v3 = vmov 0   ;;  %v2907_v4 = vmov 0.0   ;;  %v780_v29 = vlaneseq }
  0xf4   : > { %955 = vmatprep.mubr.bf16.mxu0 %v2906_v3  ;;  %2272 = vmatprep.subr.bf16.mxu1 %v2907_v4  ;;  %v2542_v5 = vld [vmem:[%s3351_s10 + $0x1c] ss:$12 sps:$4 sm:$0xff]   ;;  %v2544_v6 = vld [vmem:[%s3351_s10 + $0x18] ss:$12 sps:$4 sm:$0xff]   ;;  %v2545_v7 = vld [vmem:[%s3351_s10 + $0x34] ss:$12 sps:$4 sm:$0xff]  }
  0xf5   : > { %923 = vmatprep.subr.bf16.mxu0 %v2539_v1  ;;  %v2547_v8 = vld [vmem:[%s3351_s10 + $0x30] ss:$12 sps:$4 sm:$0xff]   ;;  %v2548_v9 = vld [vmem:[%s3351_s10 + $0x4c] ss:$12 sps:$4 sm:$0xff]   ;;  %v2550_v10 = vld [vmem:[%s3351_s10 + $0x48] ss:$12 sps:$4 sm:$0xff]  }
  0xf6   : > { %924 = vmatpush1.bf16.msra.mxu0 %v2541_v2  ;;  %v2563_v11 = vld [vmem:[%s3351_s10 + $0x8] ss:$12 sps:$4 sm:$0xff]   ;;  %v2551_v12 = vld [vmem:[%s3351_s10 + $0x64] ss:$12 sps:$4 sm:$0xff]   ;;  %v2564_v13 = vld [vmem:[%s3351_s10 + $0x20] ss:$12 sps:$4 sm:$0xff]  }
  0xf7   : > { %925 = vmatprep.subr.bf16.mxu0 %v2542_v5  ;;  %2273 = vmatpush3.bf16.msra.mxu1 %v2563_v11  ;;  %v2553_v14 = vld [vmem:[%s3351_s10 + $0x60] ss:$12 sps:$4 sm:$0xff]   ;;  %v2554_v15 = vld [vmem:[%s3351_s10 + $0x7c] ss:$12 sps:$4 sm:$0xff]   ;;  %v2556_v16 = vld [vmem:[%s3351_s10 + $0x78] ss:$12 sps:$4 sm:$0xff]  }
  0xf8   : > { %2274 = vmatprep.subr.bf16.mxu1 %v2907_v4  ;;  %v2565_v17 = vld [vmem:[%s3351_s10 + $0x38] ss:$12 sps:$4 sm:$0xff]   ;;  %v2557_v18 = vld [vmem:[%s3351_s10 + $0x94] ss:$12 sps:$4 sm:$0xff]   ;;  %v2566_v19 = vld [vmem:[%s3351_s10 + $0x50] ss:$12 sps:$4 sm:$0xff]  }
  0xf9   : > { %v2559_v20 = vld [vmem:[%s3351_s10 + $0x90] ss:$12 sps:$4 sm:$0xff]   ;;  %v2560_v21 = vld [vmem:[%s3351_s10 + $0xac] ss:$12 sps:$4 sm:$0xff]   ;;  %v2567_v22 = vld [vmem:[%s3351_s10 + $0x68] ss:$12 sps:$4 sm:$0xff]  }
  0xfa   : > { %926 = vmatpush1.bf16.msra.mxu0 %v2544_v6  ;;  %v2562_v23 = vld [vmem:[%s3351_s10 + $0xa8] ss:$12 sps:$4 sm:$0xff]   ;;  %v2568_v25 = vld [vmem:[%s3351_s10 + $0x80] ss:$12 sps:$4 sm:$0xff]   ;;  %v2569_v27 = vld [vmem:[%s3351_s10 + $0x98] ss:$12 sps:$4 sm:$0xff]  }
  0xfb   : > { %927 = vmatprep.subr.bf16.mxu0 %v2545_v7  ;;  %2275 = vmatpush3.bf16.msra.mxu1 %v2564_v13  ;;  %v3438_v24 = vld [vmem:[%s3407_s3] sm:$0xff]  ;;  %v2570_v28 = vld [vmem:[%s3351_s10 + $0xb0] ss:$12 sps:$4 sm:$0xff]   ;;  %vm2908_vm0 = vmmov 0   ;;  %v781_v30 = vshrl.u32 %v780_v29, 7  ;;  %vm1008_vm1 = vcmask 64512  }
  0xfc   : > { %2276 = vmatprep.subr.bf16.mxu1 %v2907_v4  ;;  %v745_v26 = vpack.c.bf16 %v3438_v24, %v3438_v24  ;;  %2288 = vmatprep.mubr.msk.bf16.mxu1 %vm2908_vm0, %v2907_v4  ;;  %v778_v32 = vld [vmem:[%s3385_s7] sm:$0x7]  ;;  %s2909_s27 = smov 120   ;;  %s2910_s7 = smov 112   ;;  %vm1070_vm2 = vcmask 1043456   ;;  %vm1460_vm3 = vcmask 130048  }
  0xfd   : > { %v782_v31 = vsub.s32 0, %v781_v30  ;;  %v786_v33 = vsub.s32 1, %v781_v30  ;;  %s2911_s29 = smov 104   ;;  %v790_v46 = vsub.s32 2, %v781_v30  ;;  %s2912_s18 = smov 8   ;;  %vm1462_vm4 = vcmask 195584  }
  0xfe   : > { %928 = vmatpush1.bf16.msra.mxu0 %v2547_v8  ;;  %s2913_s25 = smov 16   ;;  %s2914_s16 = smov 24   ;;  %vm1464_vm5 = vcmask 261120  }
  0xff   : > { %929 = vmatprep.subr.bf16.mxu0 %v2548_v9  ;;  %2277 = vmatpush3.bf16.msra.mxu1 %v2565_v17  ;;  %v783_v34 = vrot.slane %v778_v32, %v782_v31  ;;  %v787_v35 = vrot.slane %v778_v32, %v786_v33  ;;  %v791_v47 = vrot.slane %v778_v32, %v790_v46  ;;  %vm2188_vm6 = vmpackc.low %vm1464_vm5, %vm1464_vm5  ;;  %s3793_s30 = sld [smem:[#allocation36_spill]]  ;;  %s3799_s17 = sld [smem:[#allocation40_spill]] }
 0x100   : > { %2278 = vmatprep.subr.bf16.mxu1 %v2907_v4  ;;  %s3801_s0 = sld [smem:[#allocation22_spill]]  ;;  %s1882_s10 = sshll.u32 %s3407_s3, 4  ;;  %s3616_s10 = int_to_ptr.vmem [resolvable:$true] %s1882_s10 }
 0x101   : > { %s2765_s19 = scalar_lea.vmem %s3616_s10, 128  ;;  %p3805_p11 = scmp.ne.s32.totalorder %s3767_s14, 0 }
 0x102   : > { %930 = vmatpush1.bf16.msra.mxu0 %v2550_v10  ;;  %p2766_p12 = scmp.ne.s32.totalorder %s3616_s10, %s2765_s19 }
 0x103   : > { %931 = vmatprep.subr.bf16.mxu0 %v2551_v12  ;;  %2279 = vmatpush3.bf16.msra.mxu1 %v2566_v19 }
 0x104   : > { %2280 = vmatprep.subr.bf16.mxu1 %v2907_v4  ;;  %p2767_p5 = pnand %p2766_p12, %p3805_p11 }
 0x106   : > { %932 = vmatpush1.bf16.msra.mxu0 %v2553_v14  ;;  %s2214_s13 = sshll.u32 %s3801_s0, 7  ;;  %p2768_p0 = pneg %p2767_p5 }
 0x107   : > { %933 = vmatprep.subr.bf16.mxu0 %v2554_v15  ;;  %2281 = vmatpush3.bf16.msra.mxu1 %v2567_v22 }
 0x108   : > { %2282 = vmatprep.subr.bf16.mxu1 %v2907_v4 }
 0x10a   : > { %934 = vmatpush1.bf16.msra.mxu0 %v2556_v16 }
 0x10b   : > { %935 = vmatprep.subr.bf16.mxu0 %v2557_v18  ;;  %2283 = vmatpush3.bf16.msra.mxu1 %v2568_v25 }
 0x10c   : > { %2284 = vmatprep.subr.bf16.mxu1 %v2907_v4 }
 0x10e   : > { %936 = vmatpush1.bf16.msra.mxu0 %v2559_v20 }
 0x10f   : > { %937 = vmatprep.subr.bf16.mxu0 %v2560_v21  ;;  %2285 = vmatpush3.bf16.msra.mxu1 %v2569_v27 }
 0x110   : > { %2286 = vmatprep.subr.bf16.mxu1 %v2907_v4 }
 0x112   : > { %938 = vmatpush1.bf16.msra.mxu0 %v2562_v23 }
 0x113   : > { %2316 = vmatprep.subr.bf16.mxu0 %v2907_v4  ;;  %2287 = vmatpush3.bf16.msra.mxu1 %v2570_v28 }
 0x114   : > { %2292 = vmatprep.subr.bf16.mxu1 %v2907_v4 }
 0x115   : > { %956 = vmatmul.mubr.bf16.vlgmr.msra.gmra.mrb[0].mxu0 %v745_v26 }
 0x116   : > { %2318 = vmatprep.mubr.msk.bf16.mxu0 %vm2908_vm0, %v2907_v4  ;;  %2289 = vmatmul.mubr.bf16.vlgmr.msra.gmra.mrb[0].mxu1 %v745_v26 }
 0x117   : > { %2294 = vmatprep.mubr.msk.bf16.mxu1 %vm2908_vm0, %v2907_v4 }
 0x1e8   : > { %v957_v36 = vpop.f32.mrb[0].mxu0 }
 0x1e9   : > { %v958_v37 = vadd.f32 %v957_v36, %v783_v34  ;;  %v959_v38 = vpop.f32.mrb[1].mxu0  ;;  %v998_v48 = vpop.f32.mrb[0].mxu1 }
 0x1ea   : > { %v960_v39 = vadd.f32 %v959_v38, %v787_v35  ;;  %v961_v40 = vpop.f32.mrb[2].mxu0  ;;  %v999_v49 = vadd.f32 %v998_v48, %v791_v47  ;;  %v2290_v50 = vpop.f32.mrb[1].mxu1 }
 0x1eb   : > { %v962_v41 = vpop.f32.mrb[3].mxu0  ;;  %v1004_v42 = vmul.f32 0.35355338, %v958_v37  ;;  %v1001_v51 = vpop.f32.mrb[2].mxu1 }
 0x1ec   : > { %v1006_v43 = vpack.c.bf16 %v960_v39, %v960_v39  ;;  %v3468_v52 = vpack.c.bf16 %v999_v49, %v999_v49  ;;  %v2291_v53 = vpop.f32.mrb[3].mxu1 }
 0x1ed   : > { %v1005_v45 = vpack.c.bf16 %v1004_v42, %v1004_v42 }
 0x1ee   : > { %1118 = vrot.lane.b32.xlu1 %v1006_v43, %s2909_s27  ;;  %v1013_v44 = vsel %vm1008_vm1, %v1006_v43, 0  ;;  %v1072_v54 = vsel %vm1070_vm2, %v3468_v52, 0 }
 0x1ef   : > { %2293 = vmatpush3.bf16.xpose.msra.mxu1 %v1013_v44 }
 0x1f0   : > { %2298 = vmatprep.subr.bf16.mxu1 %v2907_v4 }
 0x1f2   : > { %1115 = vrot.lane.b32.xlu1 %v1005_v45, %s2909_s27 }
 0x1f6   : > { %1227 = vrot.lane.b32.xlu1 %v1005_v45, %s2910_s7  ;;  %2295 = vmatmul.mubr.msk.bf16.vlgmr.msra.gmra.mrb[4].mxu1 %vm1008_vm1, %v1005_v45 }
 0x1f7   : > { %2300 = vmatprep.mubr.msk.bf16.mxu1 %vm2908_vm0, %v2907_v4  ;;  %2299 = vmatpush3.bf16.msra.mxu1 %v1072_v54 }
 0x1f8   : > { %2304 = vmatprep.subr.bf16.mxu1 %v2907_v4 }
 0x1fa   : > { %1339 = vrot.lane.b32.xlu1 %v1006_v43, %s2911_s29 }
 0x1fe   : > { %1337 = vrot.lane.b32.xlu1 %v1005_v45, %s2911_s29 }
 0x260   : > { %v1119_v1 = vpop.permute.xlu1 %1118 }
 0x261   : > { %v1124_v13 = vsel %vm1008_vm1, %v1119_v1, 0 }
 0x264   : > { %v1116_v2 = vpop.permute.xlu1 %1115 }
 0x268   : > { %v1228_v5 = vpop.permute.xlu1 %1227 }
 0x26c   : > { %v1340_v8 = vpop.permute.xlu1 %1339 }
 0x26d   : > { %v1345_v11 = vsel %vm1008_vm1, %v1340_v8, 0  ;;  %v2574_v8 = vld [vmem:[%s3357_s11 + $0x18] sm:$0xff]  }
 0x270   : > { %v1338_v14 = vpop.permute.xlu1 %1337 }
 0x2c9   : > { %v1049_v55 = vpop.f32.mrb[4].mxu1 }
 0x2ca   : > { %v2296_v56 = vpop.f32.mrb[5].mxu1  ;;  %v1055_v57 = vsel %vm1008_vm1, %v1049_v55, -inf }
 0x2cb   : > { %1056 = vmax.xlane.f32.xlu0 %v1055_v57  ;;  %v1052_v58 = vpop.f32.mrb[6].mxu1 }
 0x2cc   : > { %v2297_v59 = vpop.f32.mrb[7].mxu1 }
 0x358   : > { %v1057_v60 = vpop.xlane.xlu0 %1056 }
 0x359   : > { %v1058_v61 = vsub.f32 %v1049_v55, %v1057_v60 }
 0x35b   : > { %v1059_v62 = vmul.f32 1.442695, %v1058_v61 }
 0x35d   : > { %2595 = vpow2.f32 %v1059_v62 }
 0x367   : > { %v2596_v63 = vpop.eup %2595 }
 0x368   : > { %v1061_v0 = vsel %vm1008_vm1, %v2596_v63, 0.0 }
 0x369   : > { %1062 = vadd.xlane.f32.xlu0 %v1061_v0 }
 0x37f   : > { %1229 = vrot.lane.b32.xlu0 %v1006_v43, %s2910_s7 }
 0x3f6   : > { %v1063_v3 = vpop.xlane.xlu0 %1062 }
 0x3f7   : > { %2597 = vrcp.f32 %v1063_v3 }
 0x3fa   : > { %v1230_v6 = vpop.permute.xlu0 %1229 }
 0x3fb   : > { %v1235_v7 = vsel %vm1008_vm1, %v1230_v6, 0  ;;  %v2572_v6 = vld [vmem:[%s3357_s11 + $0x8] sm:$0xff]  }
 0x3fc   : > { %2317 = vmatpush3.bf16.xpose.msra.mxu0 %v1235_v7  ;;  %v2573_v7 = vld [vmem:[%s3357_s11 + $0x10] sm:$0xff]  }
 0x3fd   : > { %2328 = vmatprep.subr.bf16.mxu0 %v2907_v4 }
 0x401   : > { %v2598_v9 = vpop.eup %2597 }
 0x402   : > { %v1065_v10 = vmul.f32 %v2598_v9, %v2596_v63  ;;  %v2575_v9 = vld [vmem:[%s3357_s11 + $0x20] sm:$0xff]  }
 0x403   : > { %2319 = vmatmul.mubr.msk.bf16.vlgmr.msra.gmra.mrb[4].mxu0 %vm1008_vm1, %v1228_v5  ;;  %v2571_v5 = vld [vmem:[%s3357_s11] sm:$0xff]  }
 0x404   : > { %2329 = vmatpush3.bf16.xpose.msra.mxu0 %v1345_v11  ;;  %v1066_v12 = vpack.c.bf16 %v1065_v10, %v1065_v10  ;;  %2330 = vmatprep.mubr.msk.bf16.mxu0 %vm2908_vm0, %v2907_v4  ;;  %v2576_v10 = vld [vmem:[%s3357_s11 + $0x28] sm:$0xff]   ;;  %v2577_v11 = vld [vmem:[%s3357_s11 + $0x30] sm:$0xff]  }
 0x405   : > { %2340 = vmatprep.subr.bf16.mxu0 %v2907_v4 }
 0x406   : > { %2301 = vmatmul.mubr.msk.bf16.vlgmr.msra.gmra.mrb[8].mxu1 %vm1008_vm1, %v1066_v12 }
 0x407   : > { %2305 = vmatpush3.bf16.xpose.msra.mxu1 %v1124_v13  ;;  %2306 = vmatprep.mubr.msk.bf16.mxu1 %vm2908_vm0, %v2907_v4 }
 0x408   : > { %2310 = vmatprep.subr.bf16.mxu1 %v2907_v4 }
 0x40b   : > { %2331 = vmatmul.mubr.msk.bf16.vlgmr.msra.gmra.mrb[8].mxu0 %vm1008_vm1, %v1338_v14 }
 0x40c   : > { %2356 = vmatprep.mubr.msk.bf16.mxu0 %vm2908_vm0, %v2907_v4  ;;  %2341 = vmatpush3.bf16.msra.mxu0 %v2571_v5 }
 0x40d   : > { %2342 = vmatprep.subr.bf16.mxu0 %v2907_v4 }
 0x40e   : > { %2307 = vmatmul.mubr.msk.bf16.vlgmr.msra.gmra.mrb[12].mxu1 %vm1008_vm1, %v1116_v2 }
 0x40f   : > { %2312 = vmatprep.mubr.msk.bf16.mxu1 %vm2908_vm0, %v2907_v4 }
 0x410   : > { %2343 = vmatpush3.bf16.msra.mxu0 %v2572_v6  ;;  %v2593_v6 = vld [vmem:[%s3403_s12 + $0x30] sm:$0xff]  }
 0x411   : > { %2344 = vmatprep.subr.bf16.mxu0 %v2907_v4 }
 0x414   : > { %2345 = vmatpush3.bf16.msra.mxu0 %v2573_v7  ;;  %v2594_v7 = vld [vmem:[%s3403_s12 + $0x38] sm:$0xff]  }
 0x415   : > { %2346 = vmatprep.subr.bf16.mxu0 %v2907_v4 }
 0x418   : > { %2347 = vmatpush3.bf16.msra.mxu0 %v2574_v8 }
 0x419   : > { %2348 = vmatprep.subr.bf16.mxu0 %v2907_v4 }
 0x41c   : > { %2349 = vmatpush3.bf16.msra.mxu0 %v2575_v9 }
 0x41d   : > { %2350 = vmatprep.subr.bf16.mxu0 %v2907_v4 }
 0x420   : > { %2351 = vmatpush3.bf16.msra.mxu0 %v2576_v10 }
 0x421   : > { %2352 = vmatprep.subr.bf16.mxu0 %v2907_v4 }
 0x424   : > { %2353 = vmatpush3.bf16.msra.mxu0 %v2577_v11 }
 0x425   : > { %2354 = vmatprep.subr.bf16.mxu0 %v2907_v4 }
 0x4d6   : > { %v1271_v15 = vpop.f32.mrb[4].mxu0 }
 0x4d7   : > { %v2320_v16 = vpop.f32.mrb[5].mxu0  ;;  %v1277_v17 = vsel %vm1008_vm1, %v1271_v15, -inf }
 0x4d8   : > { %1278 = vmax.xlane.f32.xlu0 %v1277_v17  ;;  %v1274_v18 = vpop.f32.mrb[6].mxu0  ;;  %v2578_v16 = vld [vmem:[%s3357_s11 + $0x38] sm:$0xff]   ;;  %s3794_s11 = scalar_lea.vmem %s3793_s30, %s3367_s2 }
 0x4d9   : > { %v3495_v19 = vpop.f32.mrb[8].mxu1  ;;  %v2321_v20 = vpop.f32.mrb[7].mxu0  ;;  %2355 = vmatpush3.bf16.msra.mxu0 %v2578_v16 }
 0x4da   : > { %v2302_v21 = vpop.f32.mrb[9].mxu1  ;;  %2380 = vmatprep.subr.bf16.mxu0 %v2907_v4 }
 0x4db   : > { %v1111_v22 = vpop.f32.mrb[10].mxu1 }
 0x4dc   : > { %v2303_v23 = vpop.f32.mrb[11].mxu1 }
 0x4de   : > { %v1381_v25 = vpop.f32.mrb[8].mxu0 }
 0x4df   : > { %v2332_v26 = vpop.f32.mrb[9].mxu0  ;;  %v1387_v34 = vsel %vm1008_vm1, %v1381_v25, -inf }
 0x4e0   : > { %v1384_v27 = vpop.f32.mrb[10].mxu0 }
 0x4e1   : > { %v1160_v28 = vpop.f32.mrb[12].mxu1  ;;  %v2333_v29 = vpop.f32.mrb[11].mxu0 }
 0x4e2   : > { %v2308_v30 = vpop.f32.mrb[13].mxu1  ;;  %v1166_v31 = vsel %vm1008_vm1, %v1160_v28, -inf }
 0x4e3   : > { %1167 = vmax.xlane.f32.xlu1 %v1166_v31  ;;  %v1163_v32 = vpop.f32.mrb[14].mxu1 }
 0x4e4   : > { %v2309_v33 = vpop.f32.mrb[15].mxu1 }
 0x4e7   : > { %1388 = vmax.xlane.f32.xlu1 %v1387_v34  ;;  %v2179_v34 = vld [vmem:[%s3794_s11] ss:$0 sm:$0xff] }
 0x565   : > { %v1279_v35 = vpop.xlane.xlu0 %1278 }
 0x566   : > { %v1280_v36 = vsub.f32 %v1271_v15, %v1279_v35 }
 0x568   : > { %v1281_v37 = vmul.f32 1.442695, %v1280_v36 }
 0x56a   : > { %2599 = vpow2.f32 %v1281_v37 }
 0x570   : > { %v1168_v38 = vpop.xlane.xlu1 %1167 }
 0x571   : > { %v1169_v39 = vsub.f32 %v1160_v28, %v1168_v38 }
 0x573   : > { %v1170_v44 = vmul.f32 1.442695, %v1169_v39 }
 0x574   : > { %v2600_v40 = vpop.eup %2599  ;;  %v1389_v41 = vpop.xlane.xlu1 %1388 }
 0x575   : > { %v1390_v42 = vsub.f32 %v1381_v25, %v1389_v41  ;;  %v1283_v43 = vsel %vm1008_vm1, %v2600_v40, 0.0  ;;  %v2579_v41 = vld [vmem:[%s3359_s24] sm:$0xff]  }
 0x576   : > { %1284 = vadd.xlane.f32.xlu0 %v1283_v43  ;;  %v2581_v43 = vld [vmem:[%s3359_s24 + $0x10] sm:$0xff]  }
 0x577   : > { %v1391_v45 = vmul.f32 1.442695, %v1390_v42  ;;  %v2580_v42 = vld [vmem:[%s3359_s24 + $0x8] sm:$0xff]  }
 0x579   : > { %2601 = vpow2.f32 %v1391_v45  ;;  %v2584_v45 = vld [vmem:[%s3359_s24 + $0x28] sm:$0xff]  }
 0x57a   : > { %2603 = vpow2.f32 %v1170_v44  ;;  %v2583_v44 = vld [vmem:[%s3359_s24 + $0x20] sm:$0xff]  }
 0x583   : > { %v2602_v46 = vpop.eup %2601 }
 0x584   : > { %v1393_v47 = vsel %vm1008_vm1, %v2602_v46, 0.0  ;;  %v2604_v48 = vpop.eup %2603 }
 0x585   : > { %1394 = vadd.xlane.f32.xlu1 %v1393_v47  ;;  %v1172_v49 = vsel %vm1008_vm1, %v2604_v48, 0.0  ;;  %v2586_v47 = vld [vmem:[%s3359_s24 + $0x38] sm:$0xff]  }
 0x589   : > { %1173 = vadd.xlane.f32.xlu1 %v1172_v49  ;;  %v2588_v49 = vld [vmem:[%s3403_s12 + $0x8] sm:$0xff]  }
 0x58c   : > { %1179 = vrot.lane.b32.xlu0 %v3468_v52, %s2909_s27 }
 0x59a   : > { %1289 = vrot.lane.b32.xlu1 %v3468_v52, %s2910_s7 }
 0x59e   : > { %1399 = vrot.lane.b32.xlu1 %v3468_v52, %s2911_s29 }
 0x603   : > { %v1285_v50 = vpop.xlane.xlu0 %1284 }
 0x607   : > { %v1180_v51 = vpop.permute.xlu0 %1179 }
 0x608   : > { %v1185_v53 = vsel %vm1070_vm2, %v1180_v51, 0  ;;  %v2590_v51 = vld [vmem:[%s3403_s12 + $0x18] sm:$0xff]  }
 0x609   : > { %2311 = vmatpush3.bf16.msra.mxu1 %v1185_v53  ;;  %v2591_v53 = vld [vmem:[%s3403_s12 + $0x20] sm:$0xff]  }
 0x60a   : > { %2322 = vmatprep.subr.bf16.mxu1 %v2907_v4 }
 0x612   : > { %v1395_v54 = vpop.xlane.xlu1 %1394 }
 0x616   : > { %v1174_v55 = vpop.xlane.xlu1 %1173 }
 0x617   : > { %2605 = vrcp.f32 %v1174_v55 }
 0x618   : > { %2607 = vrcp.f32 %v1285_v50  ;;  %v2589_v50 = vld [vmem:[%s3403_s12 + $0x10] sm:$0xff]  }
 0x619   : > { %2609 = vrcp.f32 %v1395_v54  ;;  %v2592_v54 = vld [vmem:[%s3403_s12 + $0x28] sm:$0xff]  }
 0x61a   : > { %v1290_v58 = vpop.permute.xlu1 %1289 }
 0x61b   : > { %v1295_v61 = vsel %vm1070_vm2, %v1290_v58, 0 }
 0x61e   : > { %v1400_v62 = vpop.permute.xlu1 %1399 }
 0x61f   : > { %v1405_v1 = vsel %vm1070_vm2, %v1400_v62, 0 }
 0x621   : > { %v2606_v56 = vpop.eup %2605 }
 0x622   : > { %v1176_v57 = vmul.f32 %v2606_v56, %v2604_v48  ;;  %v2608_v60 = vpop.eup %2607  ;;  %v2587_v48 = vld [vmem:[%s3403_s12] sm:$0xff]   ;;  %s3800_s12 = scalar_lea.vmem %s3799_s17, %s3367_s2 }
 0x623   : > { %v1287_v52 = vmul.f32 %v2608_v60, %v2600_v40  ;;  %v2610_v0 = vpop.eup %2609 }
 0x624   : > { %v1177_v59 = vpack.c.bf16 %v1176_v57, %v1176_v57  ;;  %v1397_v2 = vmul.f32 %v2610_v0, %v2602_v46  ;;  %v2585_v46 = vld [vmem:[%s3359_s24 + $0x30] sm:$0xff]  }
 0x625   : > { %v1288_v63 = vpack.c.bf16 %v1287_v52, %v1287_v52 }
 0x626   : > { %2313 = vmatmul.mubr.msk.bf16.vlgmr.msra.gmra.mrb[16].mxu1 %vm1008_vm1, %v1177_v59  ;;  %v1398_v3 = vpack.c.bf16 %v1397_v2, %v1397_v2 }
 0x627   : > { %2323 = vmatpush3.bf16.msra.mxu1 %v1295_v61  ;;  %2324 = vmatprep.mubr.msk.bf16.mxu1 %vm2908_vm0, %v2907_v4 }
 0x628   : > { %2334 = vmatprep.subr.bf16.mxu1 %v2907_v4 }
 0x62e   : > { %2325 = vmatmul.mubr.msk.bf16.vlgmr.msra.gmra.mrb[20].mxu1 %vm1008_vm1, %v1288_v63  ;;  %v2191_v63 = vld [vmem:[%s727_s28] ss:$0 sm:$0xff]  ;;  %s3797_s28 = sld [smem:[#allocation38_spill]] }
 0x62f   : > { %2335 = vmatpush3.bf16.msra.mxu1 %v1405_v1  ;;  %2336 = vmatprep.mubr.msk.bf16.mxu1 %vm2908_vm0, %v2907_v4  ;;  %v2192_v1 = vld [vmem:[%s730_s26] ss:$0 sm:$0xff] }
 0x630   : > { %2360 = vmatprep.subr.bf16.mxu1 %v2907_v4 }
 0x634   : > { %s3798_s23 = scalar_lea.vmem %s3797_s28, %s3367_s2  ;;  %s2915_s2 = smov [#allocation11]  }
 0x635   : > { %v2193_v8 = vld [vmem:[%s3798_s23] ss:$0 sm:$0xff] }
 0x636   : > { %2337 = vmatmul.mubr.msk.bf16.vlgmr.msra.gmra.mrb[24].mxu1 %vm1008_vm1, %v1398_v3 }
 0x637   : > { %2376 = vmatprep.mubr.msk.bf16.mxu1 %vm2908_vm0, %v2907_v4  ;;  %2361 = vmatpush3.bf16.msra.mxu1 %v2579_v41 }
 0x638   : > { %2362 = vmatprep.subr.bf16.mxu1 %v2907_v4 }
 0x63b   : > { %2363 = vmatpush3.bf16.msra.mxu1 %v2580_v42 }
 0x63c   : > { %2364 = vmatprep.subr.bf16.mxu1 %v2907_v4 }
 0x63f   : > { %2365 = vmatpush3.bf16.msra.mxu1 %v2581_v43 }
 0x640   : > { %2366 = vmatprep.subr.bf16.mxu1 %v2907_v4 }
 0x6f9   : > { %v1221_v12 = vpop.f32.mrb[16].mxu1 }
 0x6fa   : > { %1448 = vrot.lane.b32.xlu0 %v1221_v12, %s2912_s18  ;;  %v2314_v13 = vpop.f32.mrb[17].mxu1 }
 0x6fb   : > { %v1224_v14 = vpop.f32.mrb[18].mxu1 }
 0x6fc   : > { %v2315_v15 = vpop.f32.mrb[19].mxu1 }
 0x701   : > { %v1331_v17 = vpop.f32.mrb[20].mxu1 }
 0x702   : > { %1452 = vrot.lane.b32.xlu1 %v1331_v17, %s2913_s25  ;;  %v2326_v18 = vpop.f32.mrb[21].mxu1 }
 0x703   : > { %v1334_v20 = vpop.f32.mrb[22].mxu1 }
 0x704   : > { %v2327_v21 = vpop.f32.mrb[23].mxu1 }
 0x709   : > { %v1441_v22 = vpop.f32.mrb[24].mxu1 }
 0x70a   : > { %1456 = vrot.lane.b32.xlu0 %v1441_v22, %s2914_s16  ;;  %v2338_v23 = vpop.f32.mrb[25].mxu1 }
 0x70b   : > { %v1444_v25 = vpop.f32.mrb[26].mxu1 }
 0x70c   : > { %v2339_v26 = vpop.f32.mrb[27].mxu1 }
 0x76c   : > { %v1449_v27 = vpop.permute.xlu0 %1448 }
 0x76d   : > { %v1459_v29 = vsel %vm1008_vm1, %v3495_v19, %v1449_v27 }
 0x774   : > { %v1453_v28 = vpop.permute.xlu1 %1452 }
 0x775   : > { %v1461_v30 = vsel %vm1460_vm3, %v1459_v29, %v1453_v28 }
 0x77c   : > { %v1457_v31 = vpop.permute.xlu0 %1456 }
 0x77d   : > { %v1463_v32 = vsel %vm1462_vm4, %v1461_v30, %v1457_v31 }
 0x77e   : > { %v2189_v33 = vpack.c.bf16 %v1463_v32, %v1463_v32 }
 0x780   : > { %2357 = vmatmul.mubr.msk.bf16.vlgmr.msra.gmra.mrb[12].mxu0 %vm2188_vm6, %v2189_v33 }
 0x781   : > { %2396 = vmatprep.mubr.msk.bf16.mxu0 %vm2908_vm0, %v2907_v4  ;;  %2381 = vmatpush3.bf16.msra.mxu0 %v2587_v48 }
 0x782   : > { %2382 = vmatprep.subr.bf16.mxu0 %v2907_v4 }
 0x785   : > { %2383 = vmatpush3.bf16.msra.mxu0 %v2588_v49 }
 0x786   : > { %2384 = vmatprep.subr.bf16.mxu0 %v2907_v4 }
 0x789   : > { %2385 = vmatpush3.bf16.msra.mxu0 %v2589_v50 }
 0x78a   : > { %2386 = vmatprep.subr.bf16.mxu0 %v2907_v4 }
 0x78d   : > { %2387 = vmatpush3.bf16.msra.mxu0 %v2590_v51 }
 0x78e   : > { %2388 = vmatprep.subr.bf16.mxu0 %v2907_v4 }
 0x791   : > { %2389 = vmatpush3.bf16.msra.mxu0 %v2591_v53 }
 0x792   : > { %2390 = vmatprep.subr.bf16.mxu0 %v2907_v4 }
 0x795   : > { %2391 = vmatpush3.bf16.msra.mxu0 %v2592_v54 }
 0x796   : > { %2392 = vmatprep.subr.bf16.mxu0 %v2907_v4 }
 0x799   : > { %2393 = vmatpush3.bf16.msra.mxu0 %v2593_v6 }
 0x79a   : > { %2394 = vmatprep.subr.bf16.mxu0 %v2907_v4 }
 0x79d   : > { %2395 = vmatpush3.bf16.msra.mxu0 %v2594_v7 }
 0x853   : > { %v1572_v35 = vpop.f32.mrb[12].mxu0 }
 0x854   : > { %v1573_v36 = vadd.f32 %v2179_v34, %v1572_v35  ;;  %v2358_v19 = vpop.f32.mrb[13].mxu0  ;;  %v2211_v35 = vld [vmem:[%s733_s21] ss:$0 sm:$0xff]  ;;  %s1869_s21 = scalar_lea.sflag [#allocation4], %s3337_s15 }
 0x855   : > { %v1575_v37 = vpop.f32.mrb[14].mxu0  ;;  %v2212_v19 = vld [vmem:[%s736_s6] ss:$0 sm:$0xff]  ;;  %s2769_s6 = sshll.u32 %s2915_s2, 4  ;;  %s2770_s6 = int_to_ptr.vmem [resolvable:$false] %s2769_s6 }
 0x856   : > { %v1578_v38 = vadd.f32 %v1573_v36, %v3438_v24  ;;  %v2359_v39 = vpop.f32.mrb[15].mxu0  ;;  %v2582_v24 = vld [vmem:[%s3359_s24 + $0x18] sm:$0xff]   ;;  %s3804_s24 = sld [smem:[#allocation45_spill]]  ;;  %s2771_s20 = scalar_lea.vmem %s2770_s6, 256 }
 0x857   : > { %2367 = vmatpush3.bf16.msra.mxu1 %v2582_v24  ;;  %p2772_p9 = scmp.lt.s32.totalorder %s3616_s10, %s2770_s6  ;;  %p2773_p13 = scmp.lt.s32.totalorder %s2771_s20, %s2765_s19 }
 0x858   : > { %1581 = vadd.xlane.f32.xlu1 %v1578_v38  ;;  %v1583_v40 = vmul.f32 %v1578_v38, %v1578_v38  ;;  %2368 = vmatprep.subr.bf16.mxu1 %v2907_v4 }
 0x859   : > { %p2774_p10 = por %p2773_p13, %p2772_p9 }
 0x85a   : > { %1584 = vadd.xlane.f32.xlu0 %v1583_v40 }
 0x85b   : > { %2369 = vmatpush3.bf16.msra.mxu1 %v2583_v44  ;;  %p2775_p6 = pnand %p2774_p10, %p2768_p0 }
 0x85c   : > { %2370 = vmatprep.subr.bf16.mxu1 %v2907_v4  ;;  %s3614_s1 = scalar_lea.hbm %s3804_s24, %s2214_s13 }
 0x85f   : > { %2371 = vmatpush3.bf16.msra.mxu1 %v2584_v45 }
 0x860   : > { %2372 = vmatprep.subr.bf16.mxu1 %v2907_v4 }
 0x863   : > { %2373 = vmatpush3.bf16.msra.mxu1 %v2585_v46 }
 0x864   : > { %2374 = vmatprep.subr.bf16.mxu1 %v2907_v4  ;;  %v2202_v4 = vld [vmem:[%s3800_s12] ss:$0 sm:$0xff] }
 0x867   : > { %2375 = vmatpush3.bf16.msra.mxu1 %v2586_v47 }
 0x8e5   : > { %v1582_v55 = vpop.xlane.xlu1 %1581 }
 0x8e6   : > { %v1586_v56 = vmul.f32 0.03125, %v1582_v55 }
 0x8e7   : > { %v1585_v57 = vpop.xlane.xlu0 %1584 }
 0x8e8   : > { %v1588_v58 = vmul.f32 %v1586_v56, %v1586_v56  ;;  %v1587_v59 = vmul.f32 0.03125, %v1585_v57  ;;  %v1590_v52 = vsub.f32 %v1578_v38, %v1586_v56 }
 0x8ea   : > { %v1589_v60 = vsub.f32 %v1587_v59, %v1588_v58 }
 0x8ec   : > { %v1591_v61 = vadd.f32 1e-05, %v1589_v60 }
 0x8ee   : > { %2611 = vrsqrt.f32 %v1591_v61 }
 0x8f8   : > { %v2612_v62 = vpop.eup %2611 }
 0x8f9   : > { %v1593_v0 = vmul.f32 %v2612_v62, %v1590_v52 }
 0x8fb   : > { %v1600_v2 = vmul.f32 %v2191_v63, %v1593_v0 }
 0x8fd   : > { %v1607_v3 = vadd.f32 %v2192_v1, %v1600_v2 }
 0x8ff   : > { %v1610_v5 = vpack.c.bf16 %v1607_v3, %v1607_v3 }
 0x901   : > { %2377 = vmatmul.mubr.bf16.vlgmr.msra.gmra.mrb[28].mxu1 %v1610_v5 }
 0x9d4   : > { %v1716_v9 = vpop.f32.mrb[28].mxu1 }
 0x9d5   : > { %v1717_v10 = vadd.f32 %v2193_v8, %v1716_v9  ;;  %v2378_v11 = vpop.f32.mrb[29].mxu1 }
 0x9d6   : > { %v1719_v12 = vpop.f32.mrb[30].mxu1 }
 0x9d7   : > { %vm1722_vm7 = vcmp.ge.f32.partialorder %v1717_v10, 0.0  ;;  %v1723_v13 = vmul.f32 -0.01, %v1717_v10  ;;  %v2379_v14 = vpop.f32.mrb[31].mxu1 }
 0x9d9   : > { %v1724_v15 = vsel %vm1722_vm7, %v1717_v10, %v1723_v13 }
 0x9da   : > { %v1725_v16 = vpack.c.bf16 %v1724_v15, %v1724_v15 }
 0x9dc   : > { %2397 = vmatmul.mubr.bf16.vlgmr.msra.gmra.mrb[16].mxu0 %v1725_v16 }
 0xaaf   : > { %v1831_v17 = vpop.f32.mrb[16].mxu0 }
 0xab0   : > { %v1832_v18 = vadd.f32 %v2202_v4, %v1831_v17  ;;  %v2398_v20 = vpop.f32.mrb[17].mxu0 }
 0xab1   : > { %v1834_v21 = vpop.f32.mrb[18].mxu0 }
 0xab2   : > { %v1837_v22 = vadd.f32 %v1832_v18, %v1607_v3  ;;  %v2399_v23 = vpop.f32.mrb[19].mxu0 }
 0xab4   : > { %1840 = vadd.xlane.f32.xlu0 %v1837_v22  ;;  %v1842_v25 = vmul.f32 %v1837_v22, %v1837_v22 }
 0xab6   : > { %1843 = vadd.xlane.f32.xlu1 %v1842_v25 }
 0xb41   : > { %v1841_v26 = vpop.xlane.xlu0 %1840 }
 0xb42   : > { %v1845_v27 = vmul.f32 0.03125, %v1841_v26 }
 0xb43   : > { %v1844_v28 = vpop.xlane.xlu1 %1843 }
 0xb44   : > { %v1847_v29 = vmul.f32 %v1845_v27, %v1845_v27  ;;  %v1846_v30 = vmul.f32 0.03125, %v1844_v28  ;;  %v1849_v33 = vsub.f32 %v1837_v22, %v1845_v27 }
 0xb46   : > { %v1848_v31 = vsub.f32 %v1846_v30, %v1847_v29 }
 0xb48   : > { %v1850_v32 = vadd.f32 1e-05, %v1848_v31 }
 0xb4a   : > { %2613 = vrsqrt.f32 %v1850_v32 }
 0xb54   : > { %v2614_v34 = vpop.eup %2613 }
 0xb55   : > { %v1852_v36 = vmul.f32 %v2614_v34, %v1849_v33 }
 0xb57   : > { %v1859_v37 = vmul.f32 %v2211_v35, %v1852_v36 }
 0xb59   : > { %v1866_v38 = vadd.f32 %v2212_v19, %v1859_v37 }
 0xb5b   : > { %1867 = vst [vmem:[%s3407_s3] sm:$0xff] %v1866_v38 }
 0xb5c   : > { %2778 = shalt.err (!%p2775_p6)
}
 0xb5d   : > { %s2779_s15 = scalar_lea.hbm %s3614_s1, 128  ;;  %s2783_s22 = scalar_lea.hbm %s3804_s24, 256 }
 0xb5e   : > { %p2780_p7 = scmp.ne.s32.totalorder %s3614_s1, %s2779_s15  ;;  %p2784_p1 = scmp.lt.u32.totalorder %s3614_s1, %s3804_s24 }
 0xb5f   : > { %p2785_p3 = scmp.lt.u32.totalorder %s2783_s22, %s2779_s15  ;;  %p2787_p12 = scmp.lt.u32.totalorder %s2779_s15, %s3614_s1 }
 0xb60   : > { %p2781_p8 = pnand %p2780_p7, %p3805_p11 }
 0xb61   : > { %p2786_p4 = por %p2785_p3, %p2784_p1 }
 0xb62   : > { %p2782_p2 = pneg %p2781_p8 }
 0xb63   : > { %p2788_p5 = por %p2787_p12, %p2786_p4 }
 0xb65   : > { %p2789_p0 = pnand %p2788_p5, %p2782_p2 }
 0xb67   : > { %2792 = shalt.err (!%p2789_p0)
}
 0xb68   : > { %2414 = dma.vmem_to_hbm [thread:$0]  (%p3805_p11), %s3616_s10, 128, %s3614_s1, %s1869_s21  }
 0xb69 PF: > { %s3806_s28 = sld [smem:[#allocation25_spill]]  ;;  %s3807_s23 = sld [smem:[#allocation18_spill]] }
 0xb6a   : > { %s3808_s26 = sld [smem:[#allocation31_spill]] }
 0xb6f   : > { %p2437_p9 = scmp.ge.s32.totalorder %s3806_s28, 2  ;;  %s1894_s9 = sand.u32 1, %s3807_s23  }
 0xb70   : > { %p3809_p13 = scmp.ne.s32.totalorder %s3808_s26, 0  ;;  %s1895_s17 = scalar_lea.sflag [#allocation4], %s1894_s9 }
 0xb72   : > { %p2433_p10 = pnand %p2437_p9, %p3809_p13 }
 0xb74   : > { %2850 = dma.done.wait (!%p2433_p10), %s1895_s17, 128  }
 0xb75   : > { %2852 = vsyncadd (!%p2433_p10), %s1895_s17, 4294967168  ;;  %s35_s18 = sadd.s32 1, %s3806_s28   ;;  %s3810_s25 = sld [smem:[#allocation16_spill]] }
 0xb76   : > { %p32_p6 = scmp.ge.s32.totalorder %s35_s18, 6   ;;  %s3811_s26 = sld [smem:[#allocation17_spill]] }
 0xb77   : > { %s3812_s27 = sld [smem:[#allocation29_spill]]  ;;  %s3813_s28 = sld [smem:[#allocation19_spill]] }
 0xb78   : > { %s3814_s29 = sld [smem:[#allocation20_spill]]  ;;  %s3815_s30 = sld [smem:[#allocation30_spill]] }
 0xb79   : > { %s3816_s14 = sld [smem:[#allocation23_spill]]  ;;  %s3817_s15 = sld [smem:[#allocation24_spill]] }
 0xb7a   : > { %s3818_s16 = sld [smem:[#allocation26_spill]]  ;;  %s3819_s17 = sld [smem:[#allocation27_spill]] }
 0xb7b   :  { %34 = sbr.rel (!%p32_p6) target bundleno = 28 (0x1c), region = 193 }
 0xb82   :  { %1900 = vsyncpa [#allocation3], 1 }
 0xb83   :  { %1902 = vsyncpa [#allocation3 + $0x1], 1 }
 0xb84   :  { %1903 = vsyncpa [#allocation6], 1 }
 0xb85   :  { %1905 = vsyncpa [#allocation6 + $0x1], 1 }
 0xb86   :  { %1906 = vsyncpa [#allocation9], 1 }
 0xb87   :  { %1908 = vsyncpa [#allocation9 + $0x1], 1 }
 0xb88   :  { %1909 = vsyncpa [#allocation4], 1 }
 0xb89   :  { %1911 = vsyncpa [#allocation4 + $0x1], 1 }

</bundles_post_ra>
